<compile_context>
chip_gen: v5e
topology: v5e:2x2
jax: 0.10.0
libtpu: 0.0.40
codegen_flags: <defaults>
</compile_context>

<pallas_src>
import functools

import jax
import jax.numpy as jnp
from jax.experimental import pallas as pl
from jax.experimental.pallas import tpu as pltpu

LANE = 128            # feature dims padded to the 128-lane vreg width
TILE_M = 256          # dst-node tile (pass-1 rows / M axis)
TILE_K = 512          # src-node tile (pass-1 contraction / K axis) — fills 256-deep MXU
TILE_P2 = 512         # pass-2 row tile (pure HBM streaming)
ROW_ALIGN = max(TILE_M, TILE_K, TILE_P2)      # node padding so every tile divides n_pad
H_RESIDENT_BYTES = 8 * 1024 * 1024            # keep bf16 h fully VMEM-resident below this


# ---------------------------------------------------------------------------
# Pass 1: degree-normalized aggregation + projection + per-tile BN statistics
#   grid = (dst_tiles ["parallel"], src_tiles ["arbitrary" / K-reduction])
# ---------------------------------------------------------------------------
def gcn_agg_stats_kernel(adj_ref, hsrc_ref, dst_norm_ref, w_ref,
                         y_ref, stats_ref, acc_ref, *, tile_k, h_resident):
    k = pl.program_id(1)

    @pl.when(k == 0)
    def _init():
        acc_ref[...] = jnp.zeros_like(acc_ref)

    if h_resident:
        # Whole pre-scaled bf16 h lives in VMEM (constant index_map); slice this K chunk.
        start = pl.multiple_of(k * tile_k, tile_k)
        h_blk = hsrc_ref[pl.ds(start, tile_k), :]
    else:
        h_blk = hsrc_ref[...]

    # adj (bf16) @ h_src (bf16, already scaled by out_deg^-1/2) -> f32 accumulator.
    acc_ref[...] += jnp.dot(adj_ref[...], h_blk, preferred_element_type=jnp.float32)

    @pl.when(k == pl.num_programs(1) - 1)
    def _finalize():
        # Right norm: * in_deg(dst)^-1/2 (f32), then project with W (bf16 MXU, f32 acc).
        agg = acc_ref[...] * dst_norm_ref[...]
        y = jnp.dot(agg.astype(jnp.bfloat16), w_ref[...],
                    preferred_element_type=jnp.float32)
        # GraphConv bias intentionally omitted: a per-feature constant added before
        # training-mode BatchNorm is cancelled exactly by the mean subtraction.
        y_ref[...] = y
        # Per-dst-tile BN partial statistics.  Padded node rows are exactly zero
        # (zero adj rows -> zero acc -> zero y), so the wrapper divides by the true N.
        s = jnp.sum(y, axis=0, keepdims=True)
        ss = jnp.sum(y * y, axis=0, keepdims=True)
        stats_ref[...] = jnp.concatenate(
            [s, ss, jnp.zeros((6, y.shape[1]), jnp.float32)], axis=0)   # one unmasked store


# ---------------------------------------------------------------------------
# Pass 2: BatchNorm(train) apply + ReLU + residual    (grid over row tiles)
# ---------------------------------------------------------------------------
def gcn_bn_apply_kernel(y_ref, h_in_ref, stats_ref, gamma_ref, beta_ref, o_ref,
                        *, inv_n, eps):
    stats = stats_ref[...]
    mean = stats[0:1, :] * inv_n
    # NOTE: E[y^2]-E[y]^2 in f32; fine here, could cancel if |mean| >> std at huge N.
    var = stats[1:2, :] * inv_n - mean * mean       # biased batch variance
    scale = jax.lax.rsqrt(var + eps) * gamma_ref[...]
    shift = beta_ref[...] - mean * scale
    bn = y_ref[...] * scale + shift
    # ReLU + residual; dropout(p=0.0) is the identity.
    o_ref[...] = h_in_ref[...] + jnp.maximum(bn, 0.0)


def _pad2d(x, rows, cols):
    return jnp.pad(x, ((0, rows - x.shape[0]), (0, cols - x.shape[1])))


def gcn_layer_forward(adj_w, h, src_norm, dst_norm, W, gamma, beta, *, eps=1e-5):
    N, d_in = h.shape
    d_out = W.shape[1]
    assert d_in == d_out, "residual path requires in_dim == out_dim"

    n_pad = pl.cdiv(N, ROW_ALIGN) * ROW_ALIGN
    dp_in = pl.cdiv(d_in, LANE) * LANE
    dp_out = pl.cdiv(d_out, LANE) * LANE
    n_dst = n_pad // TILE_M
    n_src = n_pad // TILE_K
    n_p2 = n_pad // TILE_P2

    # Wrapper-side layout plumbing only (pad / pre-scale / bf16 cast).  For repeated layers
    # over a static graph, adj_p should be computed once by the caller and reused.
    adj_p = _pad2d(adj_w, n_pad, n_pad).astype(jnp.bfloat16)          # bf16 halves adj traffic
    hsrc_p = _pad2d(h * src_norm, n_pad, dp_in).astype(jnp.bfloat16)  # left norm folded in
    h_in_p = _pad2d(h, n_pad, dp_in)                                  # f32 residual input
    dst_p = _pad2d(dst_norm, n_pad, 1)
    w_p = _pad2d(W, dp_in, dp_out).astype(jnp.bfloat16)
    gamma_p = _pad2d(gamma, 1, dp_out)                                # zero-padded cols -> scale 0
    beta_p = _pad2d(beta, 1, dp_out)

    # Keep the pre-scaled bf16 h fully VMEM-resident when it fits (kills the n_dst re-read).
    h_resident = (n_pad * dp_in * 2) <= H_RESIDENT_BYTES
    if h_resident:
        h_spec = pl.BlockSpec((n_pad, dp_in), lambda i, k: (0, 0))    # constant index -> 1 DMA
    else:
        h_spec = pl.BlockSpec((TILE_K, dp_in), lambda i, k: (k, 0))   # streamed per K tile

    # TODO(synk): for genuinely sparse graphs at scale, scalar-prefetch per-dst-tile lists of
    # nonzero src tiles (PrefetchScalarGridSpec) and skip all-zero adjacency blocks.
    y, stats = pl.pallas_call(
        functools.partial(gcn_agg_stats_kernel, tile_k=TILE_K, h_resident=h_resident),
        out_shape=(jax.ShapeDtypeStruct((n_pad, dp_out), jnp.float32),
                   jax.ShapeDtypeStruct((n_dst, 8, dp_out), jnp.float32)),
        grid_spec=pltpu.PrefetchScalarGridSpec(
            num_scalar_prefetch=0,
            grid=(n_dst, n_src),
            in_specs=[
                pl.BlockSpec((TILE_M, TILE_K), lambda i, k: (i, k)),    # adj tile (streamed)
                h_spec,                                                  # pre-scaled bf16 h
                pl.BlockSpec((TILE_M, 1), lambda i, k: (i, 0)),          # dst (in-deg) norm
                pl.BlockSpec((dp_in, dp_out), lambda i, k: (0, 0)),      # W bf16 (resident)
            ],
            out_specs=[
                pl.BlockSpec((TILE_M, dp_out), lambda i, k: (i, 0)),       # pre-BN activations
                pl.BlockSpec((None, 8, dp_out), lambda i, k: (i, 0, 0)),   # partial BN stats
            ],
            scratch_shapes=[pltpu.VMEM((TILE_M, dp_in), jnp.float32)],     # K accumulator
        ),
        compiler_params=pltpu.CompilerParams(
            dimension_semantics=("parallel", "arbitrary"),
            vmem_limit_bytes=32 * 1024 * 1024,
        ),
    )(adj_p, hsrc_p, dst_p, w_p)

    # Tiny cross-tile reduction of the BN partial sums (n_dst x 8 x dp_out -> 8 x dp_out).
    stats_tot = jnp.sum(stats, axis=0)

    out_p = pl.pallas_call(
        functools.partial(gcn_bn_apply_kernel, inv_n=1.0 / N, eps=eps),
        out_shape=jax.ShapeDtypeStruct((n_pad, dp_out), jnp.float32),
        grid=(n_p2,),
        in_specs=[
            pl.BlockSpec((TILE_P2, dp_out), lambda i: (i, 0)),          # y (pre-BN)
            pl.BlockSpec((TILE_P2, dp_in), lambda i: (i, 0)),           # residual h_in
            pl.BlockSpec((8, dp_out), lambda i: (0, 0)),                # summed stats
            pl.BlockSpec((1, dp_out), lambda i: (0, 0)),                # gamma
            pl.BlockSpec((1, dp_out), lambda i: (0, 0)),                # beta
        ],
        out_specs=pl.BlockSpec((TILE_P2, dp_out), lambda i: (i, 0)),
        compiler_params=pltpu.CompilerParams(
            dimension_semantics=("parallel",),
        ),
    )(y, h_in_p, stats_tot, gamma_p, beta_p)

    return out_p[:N, :d_out]


if __name__ == "__main__":
    key = jax.random.PRNGKey(0)
    N = 200     # nodes (not a tile multiple -> exercises padding + true-N BN stats)
    D = 32      # in_dim == out_dim (residual active); padded to 128 lanes inside the wrapper

    k_adj, k_e, k_h, k_w, k_b = jax.random.split(key, 5)

    # Random sparse-ish graph as a dense adjacency adj[dst, src] with edge weights "e".
    adj_bin = (jax.random.uniform(k_adj, (N, N)) < 0.15).astype(jnp.float32)
    e = jax.random.uniform(k_e, (N, N), minval=0.5, maxval=1.5)
    adj_w = adj_bin * e

    # DGL GraphConv norm='both' uses unweighted in/out degrees.
    out_deg = jnp.clip(jnp.sum(adj_bin, axis=0), 1.0, None)
    in_deg = jnp.clip(jnp.sum(adj_bin, axis=1), 1.0, None)
    src_norm = (out_deg ** -0.5).reshape(N, 1).astype(jnp.float32)
    dst_norm = (in_deg ** -0.5).reshape(N, 1).astype(jnp.float32)

    h = jax.random.normal(k_h, (N, D), dtype=jnp.float32)
    W = jax.random.normal(k_w, (D, D), dtype=jnp.float32) / jnp.sqrt(D)
    b = 0.01 * jax.random.normal(k_b, (1, D), dtype=jnp.float32)   # cancelled by BatchNorm
    gamma = jnp.ones((1, D), dtype=jnp.float32)                    # BN weight
    beta = jnp.zeros((1, D), dtype=jnp.float32)                    # BN bias

    out = gcn_layer_forward(adj_w, h, src_norm, dst_norm, W, gamma, beta)
    out = jax.block_until_ready(out)

    # Pure-JAX reference (same bf16 MXU casts; GraphConv bias b is included here to
    # demonstrate that it cancels exactly under training-mode BatchNorm).
    h_src = h * src_norm
    agg = jnp.dot(adj_w.astype(jnp.bfloat16), h_src.astype(jnp.bfloat16),
                  preferred_element_type=jnp.float32) * dst_norm
    ref = jnp.dot(agg.astype(jnp.bfloat16), W.astype(jnp.bfloat16),
                  preferred_element_type=jnp.float32) + b
    m = jnp.mean(ref, axis=0, keepdims=True)
    v = jnp.mean((ref - m) ** 2, axis=0, keepdims=True)
    ref = (ref - m) * jax.lax.rsqrt(v + 1e-5) * gamma + beta
    ref = h + jnp.maximum(ref, 0.0)

    assert out.shape == (N, D)
    err = float(jnp.max(jnp.abs(out - ref)))
    assert err < 5e-3, f"max abs err {err}"
    print("KERNEL_OK")
</pallas_src>

<mosaic_0001>
module attributes {stable_mosaic.version = 11 : i64} {
  func.func @gcn_agg_stats_kernel(%arg0: i32, %arg1: i32, %arg2: memref<256x512xbf16, #tpu.memory_space<vmem>>, %arg3: memref<512x128xbf16, #tpu.memory_space<vmem>>, %arg4: memref<256x1xf32, #tpu.memory_space<vmem>>, %arg5: memref<128x128xbf16, #tpu.memory_space<vmem>>, %arg6: memref<256x128xf32, #tpu.memory_space<vmem>>, %arg7: memref<1x8x128xf32, #tpu.memory_space<vmem>>, %arg8: memref<256x128xf32, #tpu.memory_space<vmem>>) attributes {dimension_semantics = [#tpu.dimension_semantics<parallel>, #tpu.dimension_semantics<arbitrary>], iteration_bounds = array<i64: 2, 1>, scalar_prefetch = 0 : i64, scratch_operands = 1 : i64, tpu.core_type = #tpu.core_type<tc>, window_params = [{transform_indices = @transform_0, window_bounds = array<i64: 256, 512>}, {pipeline_mode = #tpu.pipeline_mode<synchronous>, transform_indices = @transform_1, window_bounds = array<i64: 512, 128>}, {transform_indices = @transform_2, window_bounds = array<i64: 256, 1>}, {pipeline_mode = #tpu.pipeline_mode<synchronous>, transform_indices = @transform_3, window_bounds = array<i64: 128, 128>}, {transform_indices = @transform_4, window_bounds = array<i64: 256, 128>}, {transform_indices = @transform_5, window_bounds = array<i64: 1, 8, 128>}]} {
    %c0_i32 = arith.constant 0 : i32
    %0 = arith.cmpi eq, %arg1, %c0_i32 : i32
    %1 = arith.extui %0 : i1 to i32
    %c0_i32_0 = arith.constant 0 : i32
    %2 = arith.cmpi ne, %1, %c0_i32_0 : i32
    scf.if %2 {
      %cst_9 = arith.constant 0.000000e+00 : f32
      %15 = vector.broadcast %cst_9 : f32 to vector<256x128xf32>
      %c0_10 = arith.constant 0 : index
      %c0_11 = arith.constant 0 : index
      %16 = vector.load %arg8[%c0_10, %c0_11] : memref<256x128xf32, #tpu.memory_space<vmem>>, vector<256x128xf32>
      tpu.vector_store %arg8[%c0_10, %c0_11], %15 {strides = array<i32>} : memref<256x128xf32, #tpu.memory_space<vmem>>, vector<256x128xf32>,
    } else {
    }
    %c512_i32 = arith.constant 512 : i32
    %3 = arith.muli %arg1, %c512_i32 : i32
    %4 = tpu.assume_multiple %3, 512 : i32
    %5 = arith.index_cast %4 : i32 to index
    %c0 = arith.constant 0 : index
    %6 = vector.load %arg3[%5, %c0] : memref<512x128xbf16, #tpu.memory_space<vmem>>, vector<512x128xbf16>
    %c0_1 = arith.constant 0 : index
    %c0_2 = arith.constant 0 : index
    %7 = vector.load %arg8[%c0_1, %c0_2] : memref<256x128xf32, #tpu.memory_space<vmem>>, vector<256x128xf32>
    %c0_3 = arith.constant 0 : index
    %c0_4 = arith.constant 0 : index
    %8 = vector.load %arg2[%c0_3, %c0_4] : memref<256x512xbf16, #tpu.memory_space<vmem>>, vector<256x512xbf16>
    %cst = arith.constant dense<0.000000e+00> : vector<256x128xf32>
    %9 = tpu.matmul %8, %6, %cst {dimension_numbers = #tpu.dot_dimension_numbers<[1], [0], [0], [1], [0, 0, 1, 1], [], []>} : vector<256x512xbf16>, vector<512x128xbf16>, vector<256x128xf32> -> vector<256x128xf32>
    %10 = arith.addf %7, %9 : vector<256x128xf32>
    %c0_5 = arith.constant 0 : index
    %c0_6 = arith.constant 0 : index
    %11 = vector.load %arg8[%c0_5, %c0_6] : memref<256x128xf32, #tpu.memory_space<vmem>>, vector<256x128xf32>
    tpu.vector_store %arg8[%c0_5, %c0_6], %10 {strides = array<i32>} : memref<256x128xf32, #tpu.memory_space<vmem>>, vector<256x128xf32>,
    %c0_i32_7 = arith.constant 0 : i32
    %12 = arith.cmpi eq, %arg1, %c0_i32_7 : i32
    %13 = arith.extui %12 : i1 to i32
    %c0_i32_8 = arith.constant 0 : i32
    %14 = arith.cmpi ne, %13, %c0_i32_8 : i32
    scf.if %14 {
      %c0_9 = arith.constant 0 : index
      %c0_10 = arith.constant 0 : index
      %15 = vector.load %arg8[%c0_9, %c0_10] : memref<256x128xf32, #tpu.memory_space<vmem>>, vector<256x128xf32>
      %c0_11 = arith.constant 0 : index
      %c0_12 = arith.constant 0 : index
      %16 = vector.load %arg4[%c0_11, %c0_12] : memref<256x1xf32, #tpu.memory_space<vmem>>, vector<256x1xf32>
      %17 = vector.broadcast %16 : vector<256x1xf32> to vector<256x128xf32>
      %18 = arith.mulf %15, %17 : vector<256x128xf32>
      %19 = arith.truncf %18 : vector<256x128xf32> to vector<256x128xbf16>
      %c0_13 = arith.constant 0 : index
      %c0_14 = arith.constant 0 : index
      %20 = vector.load %arg5[%c0_13, %c0_14] : memref<128x128xbf16, #tpu.memory_space<vmem>>, vector<128x128xbf16>
      %cst_15 = arith.constant dense<0.000000e+00> : vector<256x128xf32>
      %21 = tpu.matmul %19, %20, %cst_15 {dimension_numbers = #tpu.dot_dimension_numbers<[1], [0], [0], [1], [0, 0, 1, 1], [], []>} : vector<256x128xbf16>, vector<128x128xbf16>, vector<256x128xf32> -> vector<256x128xf32>
      %c0_16 = arith.constant 0 : index
      %c0_17 = arith.constant 0 : index
      %22 = vector.load %arg6[%c0_16, %c0_17] : memref<256x128xf32, #tpu.memory_space<vmem>>, vector<256x128xf32>
      tpu.vector_store %arg6[%c0_16, %c0_17], %21 {strides = array<i32>} : memref<256x128xf32, #tpu.memory_space<vmem>>, vector<256x128xf32>,
      %cst_18 = arith.constant dense<0.000000e+00> : vector<128xf32>
      %23 = vector.multi_reduction <add>, %21, %cst_18 [0] : vector<256x128xf32> to vector<128xf32>
      %24 = vector.shape_cast %23 : vector<128xf32> to vector<1x128xf32>
      %25 = arith.mulf %21, %21 : vector<256x128xf32>
      %cst_19 = arith.constant dense<0.000000e+00> : vector<128xf32>
      %26 = vector.multi_reduction <add>, %25, %cst_19 [0] : vector<256x128xf32> to vector<128xf32>
      %27 = vector.shape_cast %26 : vector<128xf32> to vector<1x128xf32>
      %cst_20 = arith.constant 0.000000e+00 : f32
      %28 = vector.broadcast %cst_20 : f32 to vector<6x128xf32>
      %29 = tpu.concatenate %24, %27, %28 in 0 : vector<1x128xf32>, vector<1x128xf32>, vector<6x128xf32> -> vector<8x128xf32>
      %c0_21 = arith.constant 0 : index
      %c0_22 = arith.constant 0 : index
      %c0_23 = arith.constant 0 : index
      %30 = vector.load %arg7[%c0_21, %c0_22, %c0_23] : memref<1x8x128xf32, #tpu.memory_space<vmem>>, vector<1x8x128xf32>
      %31 = vector.shape_cast %30 : vector<1x8x128xf32> to vector<8x128xf32>
      %32 = vector.shape_cast %29 : vector<8x128xf32> to vector<1x8x128xf32>
      tpu.vector_store %arg7[%c0_21, %c0_22, %c0_23], %32 {strides = array<i32>} : memref<1x8x128xf32, #tpu.memory_space<vmem>>, vector<1x8x128xf32>,
    } else {
    }
    return
  }
  func.func @transform_0(%arg0: i32, %arg1: i32) -> (i32, i32) {
    %c0_i32 = arith.constant 0 : i32
    return %arg0, %arg1 : i32, i32
  }
  func.func @transform_1(%arg0: i32, %arg1: i32) -> (i32, i32) {
    %c0_i32 = arith.constant 0 : i32
    %c0_i32_0 = arith.constant 0 : i32
    %c0_i32_1 = arith.constant 0 : i32
    return %c0_i32, %c0_i32_0 : i32, i32
  }
  func.func @transform_2(%arg0: i32, %arg1: i32) -> (i32, i32) {
    %c0_i32 = arith.constant 0 : i32
    %c0_i32_0 = arith.constant 0 : i32
    return %arg0, %c0_i32 : i32, i32
  }
  func.func @transform_3(%arg0: i32, %arg1: i32) -> (i32, i32) {
    %c0_i32 = arith.constant 0 : i32
    %c0_i32_0 = arith.constant 0 : i32
    %c0_i32_1 = arith.constant 0 : i32
    return %c0_i32, %c0_i32_0 : i32, i32
  }
  func.func @transform_4(%arg0: i32, %arg1: i32) -> (i32, i32) {
    %c0_i32 = arith.constant 0 : i32
    %c0_i32_0 = arith.constant 0 : i32
    return %arg0, %c0_i32 : i32, i32
  }
  func.func @transform_5(%arg0: i32, %arg1: i32) -> (i32, i32, i32) {
    %c0_i32 = arith.constant 0 : i32
    %c0_i32_0 = arith.constant 0 : i32
    %c0_i32_1 = arith.constant 0 : i32
    return %arg0, %c0_i32, %c0_i32_0 : i32, i32, i32
  }
}

</mosaic_0001>

<bundles_post_ra>
// kernel: tpu_custom_call.1
= control target key start
LH: loop header
LB: loop body
LE: loop exit
PB: predicated region body
PF: predicated region fallthrough
CT: control target
= control target key end

     0   :  { %11 = vsyncpa [#allocation4], 0  ;;  %s3524_s0 = inlined_call_operand.hbm [shape: bf16[512,512], index: 0, kind: input, shape index: {}]   ;;  %s3525_s1 = inlined_call_operand.vmem [shape: bf16[512,128], index: 1, kind: input, shape index: {}]   ;;  %s3526_s2 = inlined_call_operand.vmem [shape: f32[512,1], index: 2, kind: input, shape index: {}]   ;;  %s3527_s3 = inlined_call_operand.vmem [shape: bf16[128,128], index: 3, kind: input, shape index: {}]   ;;  %s3528_s4 = inlined_call_operand.hbm [shape: f32[512,128], index: 4, kind: output, shape index: {0}]   ;;  %s3529_s5 = inlined_call_operand.hbm [shape: f32[2,8,128], index: 5, kind: output, shape index: {1}]  }
   0x1   :  { %13 = vsyncpa [#allocation4 + $0x1], 0 }
   0x2   :  { %14 = vsyncpa [#allocation5], 0 }
   0x3   :  { %16 = vsyncpa [#allocation5 + $0x1], 0 }
   0x4   :  { %17 = vsyncpa [#allocation8], 0 }
   0x5   :  { %19 = vsyncpa [#allocation8 + $0x1], 0  ;;  %s2992_s18 = smov 0   ;;  %s2994_s19 = smov 0  }
   0x6   :  { %s2996_s20 = smov 0   ;;  %s2998_s21 = smov 0  }
   0x7   :  { %s3000_s22 = smov 0   ;;  %s3002_s23 = smov 0  }
   0x8 LB: > { %s2168_s24 = sadd.s32 4294967295, %s2955_s23   ;;  %s2169_s25 = sadd.s32 4294967294, %s2955_s23   ;;  %s2955_s23 = sphi %s3002_s23, %s25_s23   ;;  %s2951_s22 = sphi %s3000_s22, %s3538_s22   ;;  %s2947_s21 = sphi %s2998_s21, %s3537_s21   ;;  %s2943_s20 = sphi %s2996_s20, %s3536_s20   ;;  %s2939_s19 = sphi %s2994_s19, %s3535_s19   ;;  %s2935_s18 = sphi %s2992_s18, %s3534_s18  }
   0x9   : > { %s37_s26 = sadd.s32 1, %s2951_s22  ;;  %s46_s27 = sadd.s32 1, %s2943_s20 }
   0xa   : > { %p39_p0 = scmp.ge.s32.totalorder %s37_s26, 2  ;;  %p53_p1 = scmp.ne.s32.totalorder %s2943_s20, %s2939_s19 }
   0xb   : > { %p54_p2 = scmp.eq.s32.totalorder %s2955_s23, 0  ;;  %p59_p3 = scmp.ne.s32.totalorder %s2939_s19, %s2935_s18 }
   0xc   : > { %s3540_s26 = smov (%p39_p0, %s37_s26), 0  ;;  %p60_p5 = scmp.eq.s32.totalorder %s2168_s24, 0 }
   0xd   : > { %p3033_p4 = por %p54_p2, %p53_p1  ;;  %s41_s29 = ssub.s32 %s2951_s22, %s3540_s26 }
   0xe   : > { %p151_p6 = scmp.eq.s32.totalorder %s2168_s24, 1  ;;  %p44_p7 = scmp.eq.s32.totalorder %s41_s29, 0 }
   0xf   : > { %p3039_p8 = por %p60_p5, %p59_p3  ;;  %p157_p10 = scmp.eq.s32.totalorder %s2169_s25, 1 }
  0x10   : > { %p3043_p9 = por %p151_p6, %p53_p1  ;;  %p2171_p12 = scmp.ge.s32.totalorder %s2955_s23, 2 }
  0x11   : > { %s3048_s7 = scalar_select %p44_p7, %s2943_s20, %s46_s27  }
  0x12   : > { %p3050_p11 = por %p157_p10, %p59_p3  ;;  %p2753_p13 = scmp.lt.s32.totalorder %s2955_s23, 2 }
  0x13   : > { %s209_s9 = sand.u32 1, %s2943_s20   ;;  %s2606_s11 = sshll.u32 %s2951_s22, 9 }
  0x14   : > { %s2172_s10 = sshll.u32 %s209_s9, 9  ;;  %s221_s14 = scalar_lea.hbm %s3524_s0, %s2606_s11 }
  0x15   : > { %s213_s15 = scalar_lea.vmem [#allocation3], %s2172_s10  ;;  %s222_s17 = sshll.u32 %s221_s14, 4  ;;  %s223_s17 = int_to_ptr.hbm [resolvable:$true] %s222_s17 }
  0x16   : > { %s224_s16 = sshll.u32 %s213_s15, 4  ;;  %p2743_p0 = pnand %p2753_p13, %p3033_p4  ;;  %s225_s16 = int_to_ptr.vmem [resolvable:$true] %s224_s16 }
  0x17   : > { %p2176_p1 = scmp.ge.s32.totalorder %s2955_s23, 1  ;;  %s210_s24 = scalar_lea.sflag [#allocation4], %s209_s9 }
  0x18   : > { %s2957_s25 = smov 256   ;;  %s2958_s27 = smov 16  }
  0x19   : > { %2745 = dma.hbm_to_vmem [thread:$0]  (!%p2743_p0), %s223_s17, 8192, %s225_s16, %s210_s24, %s2957_s25, %s2957_s25, %s2958_s27  }
  0x1a   : > { %p241_p2 = scmp.lt.s32.totalorder %s2955_s23, 3 }
  0x1c   : > { %p242_p3 = pnand %p2176_p1, %p241_p2 }
  0x1d   : > { %s3066_s29 = sand.u32 (!%p242_p3), 1, %s2939_s19  }
  0x1e   : > { %245 = sbr.rel (%p242_p3) target bundleno = 676 (0x2a4), region = 36  ;;  %s2177_s10 = sshll.u32 (!%p242_p3), %s3066_s29, 9 }
  0x1f   : > { %s248_s11 = scalar_lea.sflag (!%p242_p3), [#allocation4], %s3066_s29  ;;  %s3070_s12 = scalar_lea.vmem (!%p242_p3), [#allocation3], %s2177_s10 }
  0x23   : > { %2922 = dma.done.wait (%p3039_p8), %s248_s11, 8192  }
  0x24   : > { %2924 = vsyncadd (%p3039_p8), %s248_s11, 4294959104  ;;  %s2180_s28 = sshll.u32 %s2947_s21, 5  ;;  %v2614_v0 = vld [vmem:[%s3525_s1 + $0x38] sm:$0xff]  ;;  %v2613_v1 = vld [vmem:[%s3525_s1 + $0x30] sm:$0xff]  ;;  %v2959_v2 = vmov 0   ;;  %s2711_s11 = sshll.u32 %s2947_s21, 8 }
  0x25   : > { %p292_p4 = scmp.lt.s32.totalorder %s2180_s28, 63  ;;  %2712 = vmatpush.bf16.msra.mxu1 %v2614_v0  ;;  %2713 = vmatpush.bf16.msra.mxu2 %v2614_v0  ;;  %v2612_v4 = vld [vmem:[%s3525_s1 + $0x28] sm:$0xff]  ;;  %v2611_v5 = vld [vmem:[%s3525_s1 + $0x20] sm:$0xff]  ;;  %v2610_v7 = vld [vmem:[%s3525_s1 + $0x18] sm:$0xff]  ;;  %s2019_s13 = scalar_lea.hbm %s3528_s4, %s2711_s11 }
  0x26   : > { %2714 = vmatpush.bf16.msra.mxu3 %v2614_v0  ;;  %2808 = vset.pattern.permute.xlu0 %v2959_v2  ;;  %v2609_v8 = vld [vmem:[%s3525_s1 + $0x10] sm:$0xff]  ;;  %v2608_v11 = vld [vmem:[%s3525_s1 + $0x8] sm:$0xff]  ;;  %v2607_v12 = vld [vmem:[%s3525_s1] sm:$0xff]  ;;  %s2022_s15 = sshll.u32 %s2019_s13, 4  ;;  %s2003_s16 = scalar_lea.sflag [#allocation5], %s3066_s29  ;;  %s2023_s15 = int_to_ptr.hbm [resolvable:$true] %s2022_s15 }
  0x27   : > { %s3542_s28 = smov (!%p292_p4, %s2180_s28), 63  ;;  %2809 = vset.pattern.permute.xlu1 %v2959_v2  ;;  %1011 = vmatpush.bf16.msra.mxu0 %v2614_v0  ;;  %v2248_v13 = vld [vmem:[%s3070_s12 + $0x80] sm:$0xf]  ;;  %v2657_v15 = vld [vmem:[%s3070_s12 + $0x8c] sm:$0xf0]  ;;  %v2630_v20 = vld [vmem:[%s3525_s1 + $0xb8] sm:$0xff] }
  0x28   : > { %s2181_s9 = sshll.u32 %s3542_s28, 3  ;;  %2810 = vset.pattern.permute.xlu2 %v2959_v2  ;;  %v2312_v16 = vld [vmem:[%s3070_s12 + $0x100] sm:$0xf]  ;;  %v2673_v17 = vld [vmem:[%s3070_s12 + $0x10c] sm:$0xf0]  ;;  %v2638_v21 = vld [vmem:[%s3525_s1 + $0xf8] sm:$0xff]  ;;  %v2249_v23 = vor.u32 %v2657_v15, %v2248_v13 }
  0x29   : > { %s3086_s30 = scalar_lea.vmem %s3526_s2, %s2181_s9  ;;  %2715 = vmatpush.bf16.msra.mxu1 %v2613_v1  ;;  %2716 = vmatpush.bf16.msra.mxu2 %v2613_v1  ;;  %v2376_v18 = vld [vmem:[%s3070_s12 + $0x180] sm:$0xf]  ;;  %v2689_v19 = vld [vmem:[%s3070_s12 + $0x18c] sm:$0xf0]  ;;  %v2622_v22 = vld [vmem:[%s3525_s1 + $0x78] sm:$0xff]  ;;  %v2313_v24 = vor.u32 %v2673_v17, %v2312_v16  ;;  %s2855_s17 = sshra.s32 %s2023_s15, 4  ;;  %s2856_s17 = int_to_ptr.hbm [resolvable:$true] %s2855_s17 }
  0x2a   : > { %v1466_v3 = vld [vmem:[%s3086_s30] sm:$0xff]  ;;  %2717 = vmatpush.bf16.msra.mxu3 %v2613_v1  ;;  %v1467_v6 = vld [vmem:[%s3086_s30 + $0x8] sm:$0xff]  ;;  %v1468_v9 = vld [vmem:[%s3086_s30 + $0x10] sm:$0xff]  ;;  %v2377_v25 = vor.u32 %v2689_v19, %v2376_v18  ;;  %s2857_s24 = scalar_lea.hbm %s2856_s17, 256  ;;  %p2862_p8 = scmp.lt.s32.totalorder %s2856_s17, %s3528_s4 }
  0x2b   : > { %1500 = vperm.xlu0 %2808, %v1466_v3   ;;  %1012 = vmatpush.bf16.msra.mxu0 %v2613_v1  ;;  %v1472_v10 = vld [vmem:[%s3086_s30 + $0x30] sm:$0xff]  ;;  %v1469_v14 = vld [vmem:[%s3086_s30 + $0x18] sm:$0xff]  ;;  %v1475_v27 = vld [vmem:[%s3086_s30 + $0x48] sm:$0xff]  ;;  %p2858_p5 = scmp.ne.s32.totalorder %s2856_s17, %s2857_s24 }
  0x2c   : > { %1510 = vperm.xlu1 %2809, %v1468_v9   ;;  %v2629_v26 = vld [vmem:[%s3525_s1 + $0xb0] sm:$0xff]  ;;  %v2628_v30 = vld [vmem:[%s3525_s1 + $0xa8] sm:$0xff]  ;;  %v1473_v31 = vld [vmem:[%s3086_s30 + $0x38] sm:$0xff] }
  0x2d   : > { %2718 = vmatpush.bf16.msra.mxu1 %v2612_v4  ;;  %2719 = vmatpush.bf16.msra.mxu2 %v2612_v4  ;;  %v2637_v28 = vld [vmem:[%s3525_s1 + $0xf0] sm:$0xff]  ;;  %v2636_v32 = vld [vmem:[%s3525_s1 + $0xe8] sm:$0xff]  ;;  %v2627_v34 = vld [vmem:[%s3525_s1 + $0xa0] sm:$0xff]  ;;  %p2859_p6 = pnand %p2858_p5, %p3043_p9 }
  0x2e   : > { %2720 = vmatpush.bf16.msra.mxu3 %v2612_v4  ;;  %v2621_v29 = vld [vmem:[%s3525_s1 + $0x70] sm:$0xff]  ;;  %v2620_v33 = vld [vmem:[%s3525_s1 + $0x68] sm:$0xff]  ;;  %v1478_v35 = vld [vmem:[%s3086_s30 + $0x60] sm:$0xff] }
  0x2f   : > { %1013 = vmatpush.bf16.msra.mxu0 %v2612_v4  ;;  %v2635_v36 = vld [vmem:[%s3525_s1 + $0xe0] sm:$0xff]  ;;  %v2661_v39 = vld [vmem:[%s3070_s12 + $0xac] sm:$0xf0]  ;;  %v2626_v45 = vld [vmem:[%s3525_s1 + $0x98] sm:$0xff]  ;;  %p2860_p7 = pneg %p2859_p6 }
  0x30   : > { %v2619_v37 = vld [vmem:[%s3525_s1 + $0x60] sm:$0xff]  ;;  %v2677_v41 = vld [vmem:[%s3070_s12 + $0x12c] sm:$0xf0]  ;;  %v2634_v46 = vld [vmem:[%s3525_s1 + $0xd8] sm:$0xff] }
  0x31   : > { %2721 = vmatpush.bf16.msra.mxu1 %v2611_v5  ;;  %2722 = vmatpush.bf16.msra.mxu2 %v2611_v5  ;;  %v2264_v38 = vld [vmem:[%s3070_s12 + $0xa0] sm:$0xf]  ;;  %v1476_v42 = vld [vmem:[%s3086_s30 + $0x50] sm:$0xff]  ;;  %v2618_v47 = vld [vmem:[%s3525_s1 + $0x58] sm:$0xff] }
  0x32   : > { %2723 = vmatpush.bf16.msra.mxu3 %v2611_v5  ;;  %v2328_v40 = vld [vmem:[%s3070_s12 + $0x120] sm:$0xf]  ;;  %v2693_v44 = vld [vmem:[%s3070_s12 + $0x1ac] sm:$0xf0]  ;;  %v2265_v48 = vor.u32 %v2661_v39, %v2264_v38  ;;  %v1481_v52 = vld [vmem:[%s3086_s30 + $0x78] sm:$0xff] }
  0x33   : > { %1505 = vperm.xlu0 %2808, %v1467_v6   ;;  %1014 = vmatpush.bf16.msra.mxu0 %v2611_v5  ;;  %v2392_v43 = vld [vmem:[%s3070_s12 + $0x1a0] sm:$0xf]  ;;  %v2329_v49 = vor.u32 %v2677_v41, %v2328_v40  ;;  %v2625_v51 = vld [vmem:[%s3525_s1 + $0x90] sm:$0xff]  ;;  %v2624_v55 = vld [vmem:[%s3525_s1 + $0x88] sm:$0xff] }
  0x34   : > { %1515 = vperm.xlu1 %2809, %v1469_v14   ;;  %v2393_v50 = vor.u32 %v2693_v44, %v2392_v43  ;;  %v2633_v53 = vld [vmem:[%s3525_s1 + $0xd0] sm:$0xff]  ;;  %v2632_v56 = vld [vmem:[%s3525_s1 + $0xc8] sm:$0xff]  ;;  %v2184_v59 = vld [vmem:[%s3070_s12] sm:$0xf] }
  0x35   : > { %2724 = vmatpush.bf16.msra.mxu1 %v2610_v7  ;;  %2725 = vmatpush.bf16.msra.mxu2 %v2610_v7  ;;  %v2617_v54 = vld [vmem:[%s3525_s1 + $0x50] sm:$0xff]  ;;  %v1479_v57 = vld [vmem:[%s3086_s30 + $0x68] sm:$0xff]  ;;  %v2623_v63 = vld [vmem:[%s3525_s1 + $0x80] sm:$0xff] }
  0x36   : > { %2726 = vmatpush.bf16.msra.mxu3 %v2610_v7  ;;  %v2616_v58 = vld [vmem:[%s3525_s1 + $0x48] sm:$0xff]  ;;  %v2641_v60 = vld [vmem:[%s3070_s12 + $0xc] sm:$0xf0]  ;;  %v2631_v0 = vld [vmem:[%s3525_s1 + $0xc0] sm:$0xff] }
  0x37   : > { %1015 = vmatpush.bf16.msra.mxu0 %v2610_v7  ;;  %v2185_v61 = vor.u32 %v2641_v60, %v2184_v59  ;;  %v1484_v62 = vld [vmem:[%s3086_s30 + $0x90] sm:$0xff]  ;;  %v2615_v1 = vld [vmem:[%s3525_s1 + $0x40] sm:$0xff]  ;;  %v1485_v14 = vld [vmem:[%s3086_s30 + $0x98] sm:$0xff] }
  0x38   : > { %v2280_v2 = vld [vmem:[%s3070_s12 + $0xc0] sm:$0xf]  ;;  %v2665_v3 = vld [vmem:[%s3070_s12 + $0xcc] sm:$0xf0]  ;;  %v1471_v19 = vld [vmem:[%s3086_s30 + $0x28] sm:$0xff] }
  0x39   : > { %2727 = vmatpush.bf16.msra.mxu1 %v2609_v8  ;;  %2728 = vmatpush.bf16.msra.mxu2 %v2609_v8  ;;  %v2344_v4 = vld [vmem:[%s3070_s12 + $0x140] sm:$0xf]  ;;  %v2681_v5 = vld [vmem:[%s3070_s12 + $0x14c] sm:$0xf0]  ;;  %v2281_v9 = vor.u32 %v2665_v3, %v2280_v2  ;;  %v2639_v38 = vld [vmem:[%s3070_s12 + $0x4] sm:$0xf] }
  0x3a   : > { %2729 = vmatpush.bf16.msra.mxu3 %v2609_v8  ;;  %v1482_v6 = vld [vmem:[%s3086_s30 + $0x80] sm:$0xff]  ;;  %v2645_v16 = vld [vmem:[%s3070_s12 + $0x2c] sm:$0xf0]  ;;  %v2186_v39 = vld [vmem:[%s3070_s12 + $0x10] sm:$0xf0] }
  0x3b   : > { %1530 = vperm.xlu0 %2808, %v1472_v10   ;;  %1016 = vmatpush.bf16.msra.mxu0 %v2609_v8  ;;  %v2408_v7 = vld [vmem:[%s3070_s12 + $0x1c0] sm:$0xf]  ;;  %v2697_v8 = vld [vmem:[%s3070_s12 + $0x1cc] sm:$0xf0]  ;;  %v2345_v10 = vor.u32 %v2681_v5, %v2344_v4  ;;  %v2192_v40 = vld [vmem:[%s3070_s12 + $0x8] sm:$0xf] }
  0x3c   : > { %1535 = vperm.xlu1 %2809, %v1473_v31   ;;  %v1470_v13 = vld [vmem:[%s3086_s30 + $0x20] sm:$0xff]  ;;  %v2642_v41 = vld [vmem:[%s3070_s12 + $0x14] sm:$0xf0]  ;;  %v2640_v43 = vld [vmem:[%s3070_s12 + $0xc] sm:$0xf] }
  0x3d   : > { %2730 = vmatpush.bf16.msra.mxu1 %v2608_v11  ;;  %2731 = vmatpush.bf16.msra.mxu2 %v2608_v11  ;;  %v2200_v15 = vld [vmem:[%s3070_s12 + $0x20] sm:$0xf]  ;;  %v2194_v44 = vld [vmem:[%s3070_s12 + $0x18] sm:$0xf0]  ;;  %v2218_v2 = vld [vmem:[%s3070_s12 + $0x50] sm:$0xf0] }
  0x3e   : > { %2732 = vmatpush.bf16.msra.mxu3 %v2608_v11  ;;  %1520 = vperm.xlu2 %2810, %v1470_v13   ;;  %v2201_v17 = vor.u32 %v2645_v16, %v2200_v15  ;;  %v1490_v18 = vld [vmem:[%s3086_s30 + $0xc0] sm:$0xff]  ;;  %v2210_v59 = vld [vmem:[%s3070_s12 + $0x38] sm:$0xf0]  ;;  %v2224_v3 = vld [vmem:[%s3070_s12 + $0x48] sm:$0xf] }
  0x3f   : > { %1017 = vmatpush.bf16.msra.mxu0 %v2608_v11  ;;  %v2409_v11 = vor.u32 %v2697_v8, %v2408_v7  ;;  %v1474_v31 = vld [vmem:[%s3086_s30 + $0x40] sm:$0xff]  ;;  %v2650_v4 = vld [vmem:[%s3070_s12 + $0x54] sm:$0xf0]  ;;  %v2648_v5 = vld [vmem:[%s3070_s12 + $0x4c] sm:$0xf] }
  0x40   : > { %v2225_v8 = vor.u32 %v2650_v4, %v2224_v3  ;;  %v2240_v13 = vld [vmem:[%s3070_s12 + $0x68] sm:$0xf]  ;;  %v2652_v15 = vld [vmem:[%s3070_s12 + $0x6c] sm:$0xf]  ;;  %v2242_v16 = vld [vmem:[%s3070_s12 + $0x78] sm:$0xf0] }
  0x41   : > { %2733 = vmatpush.bf16.msra.mxu1 %v2607_v12  ;;  %2734 = vmatpush.bf16.msra.mxu2 %v2607_v12 }
  0x42   : > { %2735 = vmatpush.bf16.msra.mxu3 %v2607_v12 }
  0x43   : > { %1545 = vperm.xlu0 %2808, %v1475_v27   ;;  %1018 = vmatpush.bf16.msra.mxu0 %v2607_v12  ;;  %v1487_v12 = vld [vmem:[%s3086_s30 + $0xa8] sm:$0xff] }
  0x44   : > { %1039 = vmatmul.bf16.vlgmr.msra.gmra.mxu1 %v2249_v23  ;;  %1059 = vmatmul.bf16.vlgmr.msra.gmra.mxu2 %v2313_v24  ;;  %v2685_v23 = vld [vmem:[%s3070_s12 + $0x16c] sm:$0xf0] }
  0x45   : > { %1189 = vmatpush.bf16.msrb.mxu2 %v2630_v20  ;;  %1100 = vmatpush.bf16.msrb.mxu1 %v2622_v22  ;;  %v2296_v20 = vld [vmem:[%s3070_s12 + $0xe0] sm:$0xf]  ;;  %v1488_v24 = vld [vmem:[%s3086_s30 + $0xb0] sm:$0xff] }
  0x46   : > { %1278 = vmatpush.bf16.msrb.mxu3 %v2638_v21  ;;  %1550 = vperm.xlu1 %2809, %v1476_v42   ;;  %v2669_v21 = vld [vmem:[%s3070_s12 + $0xec] sm:$0xf0]  ;;  %v2360_v22 = vld [vmem:[%s3070_s12 + $0x160] sm:$0xf] }
  0x47   : > { %1079 = vmatmul.bf16.vlgmr.msra.gmra.mxu3 %v2377_v25  ;;  %1019 = vmatmul.bf16.vlgmr.msra.gmra.mxu0 %v2185_v61  ;;  %v2424_v25 = vld [vmem:[%s3070_s12 + $0x1e0] sm:$0xf]  ;;  %v2297_v27 = vor.u32 %v2669_v21, %v2296_v20  ;;  %v2245_v20 = vor.u32 %v2652_v15, %v2242_v16  ;;  %v2710_v21 = vld [vmem:[%s3527_s3 + $0x38] sm:$0xff] }
  0x48   : > { %1525 = vperm.xlu2 %2810, %v1471_v19   ;;  %v1494_v42 = vld [vmem:[%s3086_s30 + $0xe0] sm:$0xff]  ;;  %v1495_v19 = vld [vmem:[%s3086_s30 + $0xe8] sm:$0xff]  ;;  %1770 = vmatpush.bf16.msrb.mxu0 %v2710_v21 }
  0x49   : > { %1190 = vmatpush.bf16.msrb.mxu2 %v2629_v26  ;;  %1101 = vmatpush.bf16.msrb.mxu1 %v2621_v29  ;;  %v2701_v26 = vld [vmem:[%s3070_s12 + $0x1ec] sm:$0xf0] }
  0x4a   : > { %1279 = vmatpush.bf16.msrb.mxu3 %v2637_v28  ;;  %v2361_v28 = vor.u32 %v2685_v23, %v2360_v22  ;;  %v2425_v29 = vor.u32 %v2701_v26, %v2424_v25  ;;  %v2655_v22 = vld [vmem:[%s3070_s12 + $0x84] sm:$0xf]  ;;  %v2250_v23 = vld [vmem:[%s3070_s12 + $0x90] sm:$0xf0]  ;;  %v2658_v25 = vld [vmem:[%s3070_s12 + $0x94] sm:$0xf0] }
  0x4b   : > { %1560 = vperm.xlu0 %2808, %v1478_v35   ;;  %v2656_v26 = vld [vmem:[%s3070_s12 + $0x8c] sm:$0xf] }
  0x4d   : > { %1191 = vmatpush.bf16.msrb.mxu2 %v2628_v30  ;;  %1102 = vmatpush.bf16.msrb.mxu1 %v2620_v33  ;;  %v1493_v30 = vld [vmem:[%s3086_s30 + $0xd8] sm:$0xff]  ;;  %v2216_v33 = vld [vmem:[%s3070_s12 + $0x40] sm:$0xf] }
  0x4e   : > { %1280 = vmatpush.bf16.msrb.mxu3 %v2636_v32  ;;  %1565 = vperm.xlu1 %2809, %v1479_v57   ;;  %v1491_v32 = vld [vmem:[%s3086_s30 + $0xc8] sm:$0xff]  ;;  %v2646_v57 = vld [vmem:[%s3070_s12 + $0x34] sm:$0xf0] }
  0x50   : > { %1540 = vperm.xlu2 %2810, %v1474_v31  }
  0x51   : > { %1192 = vmatpush.bf16.msrb.mxu2 %v2627_v34  ;;  %1103 = vmatpush.bf16.msrb.mxu1 %v2619_v37  ;;  %v2649_v34 = vld [vmem:[%s3070_s12 + $0x4c] sm:$0xf0]  ;;  %v1477_v37 = vld [vmem:[%s3086_s30 + $0x58] sm:$0xff] }
  0x52   : > { %1281 = vmatpush.bf16.msrb.mxu3 %v2635_v36  ;;  %v2217_v35 = vor.u32 %v2649_v34, %v2216_v33  ;;  %v1496_v36 = vld [vmem:[%s3086_s30 + $0xf0] sm:$0xff] }
  0x53   : > { %1575 = vperm.xlu0 %2808, %v1481_v52  }
  0x54   : > { %1044 = vmatmul.bf16.gmra.mxu1 %v2265_v48  ;;  %1064 = vmatmul.bf16.gmra.mxu2 %v2329_v49  ;;  %v1480_v48 = vld [vmem:[%s3086_s30 + $0x70] sm:$0xff]  ;;  %v1497_v49 = vld [vmem:[%s3086_s30 + $0xf8] sm:$0xff] }
  0x55   : > { %1193 = vmatpush.bf16.msrb.mxu2 %v2626_v45  ;;  %1104 = vmatpush.bf16.msrb.mxu1 %v2618_v47  ;;  %v2189_v45 = vor.u32 %v2639_v38, %v2186_v39  ;;  %v2197_v47 = vor.u32 %v2640_v43, %v2194_v44  ;;  %v2266_v38 = vld [vmem:[%s3070_s12 + $0xb0] sm:$0xf0]  ;;  %v2272_v39 = vld [vmem:[%s3070_s12 + $0xa8] sm:$0xf] }
  0x56   : > { %1282 = vmatpush.bf16.msrb.mxu3 %v2634_v46  ;;  %1580 = vperm.xlu1 %2809, %v1482_v6   ;;  %v2193_v46 = vor.u32 %v2642_v41, %v2192_v40  ;;  %v2226_v6 = vld [vmem:[%s3070_s12 + $0x58] sm:$0xf0]  ;;  %v2662_v40 = vld [vmem:[%s3070_s12 + $0xb4] sm:$0xf0]  ;;  %v2660_v41 = vld [vmem:[%s3070_s12 + $0xac] sm:$0xf] }
  0x57   : > { %1084 = vmatmul.bf16.gmra.mxu3 %v2393_v50  ;;  %1024 = vmatmul.bf16.gmra.mxu0 %v2201_v17  ;;  %v2232_v50 = vld [vmem:[%s3070_s12 + $0x60] sm:$0xf] }
  0x58   : > { %1555 = vperm.xlu2 %2810, %v1477_v37   ;;  %v2659_v37 = vld [vmem:[%s3070_s12 + $0xa4] sm:$0xf] }
  0x59   : > { %1194 = vmatpush.bf16.msrb.mxu2 %v2625_v51  ;;  %1105 = vmatpush.bf16.msrb.mxu1 %v2617_v54  ;;  %v2653_v51 = vld [vmem:[%s3070_s12 + $0x6c] sm:$0xf0]  ;;  %v2643_v54 = vld [vmem:[%s3070_s12 + $0x24] sm:$0xf] }
  0x5a   : > { %1283 = vmatpush.bf16.msrb.mxu3 %v2633_v53  ;;  %v2233_v52 = vor.u32 %v2653_v51, %v2232_v50  ;;  %v1483_v53 = vld [vmem:[%s3086_s30 + $0x88] sm:$0xff] }
  0x5b   : > { %1590 = vperm.xlu0 %2808, %v1484_v62  }
  0x5d   : > { %1195 = vmatpush.bf16.msrb.mxu2 %v2624_v55  ;;  %1106 = vmatpush.bf16.msrb.mxu1 %v2616_v58  ;;  %v2202_v55 = vld [vmem:[%s3070_s12 + $0x30] sm:$0xf0]  ;;  %v2644_v58 = vld [vmem:[%s3070_s12 + $0x2c] sm:$0xf] }
  0x5e   : > { %1284 = vmatpush.bf16.msrb.mxu3 %v2632_v56  ;;  %1595 = vperm.xlu1 %2809, %v1485_v14   ;;  %v2208_v56 = vld [vmem:[%s3070_s12 + $0x28] sm:$0xf]  ;;  %v2205_v60 = vor.u32 %v2643_v54, %v2202_v55  ;;  %v2213_v62 = vor.u32 %v2644_v58, %v2210_v59  ;;  %v2654_v14 = vld [vmem:[%s3070_s12 + $0x74] sm:$0xf0]  ;;  %v2663_v54 = vld [vmem:[%s3070_s12 + $0xc4] sm:$0xf] }
  0x5f   : > { %v2209_v61 = vor.u32 %v2646_v57, %v2208_v56  ;;  %v2282_v55 = vld [vmem:[%s3070_s12 + $0xd0] sm:$0xf0]  ;;  %v2288_v56 = vld [vmem:[%s3070_s12 + $0xc8] sm:$0xf]  ;;  %v2666_v57 = vld [vmem:[%s3070_s12 + $0xd4] sm:$0xf0] }
  0x60   : > { %1570 = vperm.xlu2 %2810, %v1480_v48   ;;  %v2664_v58 = vld [vmem:[%s3070_s12 + $0xcc] sm:$0xf]  ;;  %v2290_v59 = vld [vmem:[%s3070_s12 + $0xd8] sm:$0xf0] }
  0x61   : > { %1196 = vmatpush.bf16.msrb.mxu2 %v2623_v63  ;;  %1107 = vmatpush.bf16.msrb.mxu1 %v2615_v1  ;;  %v1486_v63 = vld [vmem:[%s3086_s30 + $0xa0] sm:$0xff] }
  0x62   : > { %1285 = vmatpush.bf16.msrb.mxu3 %v2631_v0  ;;  %v1489_v0 = vld [vmem:[%s3086_s30 + $0xb8] sm:$0xff]  ;;  %v2647_v1 = vld [vmem:[%s3070_s12 + $0x44] sm:$0xf] }
  0x63   : > { %1605 = vperm.xlu0 %2808, %v1487_v12   ;;  %v2221_v7 = vor.u32 %v2647_v1, %v2218_v2  ;;  %v2234_v12 = vld [vmem:[%s3070_s12 + $0x70] sm:$0xf0]  ;;  %v2293_v2 = vor.u32 %v2664_v58, %v2290_v59  ;;  %v2676_v59 = vld [vmem:[%s3070_s12 + $0x12c] sm:$0xf] }
  0x64   : > { %1049 = vmatmul.bf16.gmra.mxu1 %v2281_v9  ;;  %1069 = vmatmul.bf16.gmra.mxu2 %v2345_v10  ;;  %v2229_v9 = vor.u32 %v2648_v5, %v2226_v6  ;;  %v1492_v10 = vld [vmem:[%s3086_s30 + $0xd0] sm:$0xff]  ;;  %v2667_v6 = vld [vmem:[%s3070_s12 + $0xe4] sm:$0xf]  ;;  %s2861_s30 = scalar_lea.hbm %s3528_s4, 512 }
  0x65   : > { %p2863_p10 = scmp.lt.s32.totalorder %s2861_s30, %s2857_s24 }
  0x66   : > { %1610 = vperm.xlu1 %2809, %v1488_v24   ;;  %v2256_v24 = vld [vmem:[%s3070_s12 + $0x88] sm:$0xf] }
  0x67   : > { %1089 = vmatmul.bf16.gmra.mxu3 %v2409_v11  ;;  %1029 = vmatmul.bf16.gmra.mxu0 %v2217_v35  ;;  %v2651_v11 = vld [vmem:[%s3070_s12 + $0x64] sm:$0xf]  ;;  %v2708_v35 = vld [vmem:[%s3527_s3 + $0x28] sm:$0xff]  ;;  %p2864_p13 = por %p2863_p10, %p2862_p8 }
  0x68   : > { %1585 = vperm.xlu2 %2810, %v1483_v53   ;;  %v2237_v17 = vor.u32 %v2651_v11, %v2234_v12  ;;  %v2668_v11 = vld [vmem:[%s3070_s12 + $0xec] sm:$0xf]  ;;  %v2306_v12 = vld [vmem:[%s3070_s12 + $0xf8] sm:$0xf0] }
  0x69   : > { %p2865_p0 = pnand %p2864_p13, %p2860_p7 }
  0x6b   : > { %1620 = vperm.xlu0 %2808, %v1490_v18   ;;  %v2241_v18 = vor.u32 %v2654_v14, %v2240_v13 }
  0x6e   : > { %1625 = vperm.xlu1 %2809, %v1491_v32  }
  0x70   : > { %1600 = vperm.xlu2 %2810, %v1486_v63   ;;  %v2289_v63 = vor.u32 %v2666_v57, %v2288_v56  ;;  %v2336_v56 = vld [vmem:[%s3070_s12 + $0x128] sm:$0xf]  ;;  %v2678_v57 = vld [vmem:[%s3070_s12 + $0x134] sm:$0xf0] }
  0x73   : > { %1635 = vperm.xlu0 %2808, %v1493_v30   ;;  %v2709_v30 = vld [vmem:[%s3527_s3 + $0x30] sm:$0xff] }
  0x74   : > { %1054 = vmatmul.bf16.gmra.mxu1 %v2297_v27  ;;  %1074 = vmatmul.bf16.gmra.mxu2 %v2361_v28  ;;  %v2258_v27 = vld [vmem:[%s3070_s12 + $0x98] sm:$0xf0]  ;;  %v2253_v28 = vor.u32 %v2655_v22, %v2250_v23 }
  0x75   : > { %v2261_v32 = vor.u32 %v2656_v26, %v2258_v27  ;;  %1771 = vmatpush.bf16.msrb.mxu0 %v2709_v30  ;;  %v2320_v26 = vld [vmem:[%s3070_s12 + $0x108] sm:$0xf]  ;;  %v2674_v27 = vld [vmem:[%s3070_s12 + $0x114] sm:$0xf0] }
  0x76   : > { %1640 = vperm.xlu1 %2809, %v1494_v42   ;;  %v2274_v42 = vld [vmem:[%s3070_s12 + $0xb8] sm:$0xf0] }
  0x77   : > { %1094 = vmatmul.bf16.gmra.mxu3 %v2425_v29  ;;  %1034 = vmatmul.bf16.gmra.mxu0 %v2233_v52  ;;  %v2257_v29 = vor.u32 %v2658_v25, %v2256_v24  ;;  %v2706_v52 = vld [vmem:[%s3527_s3 + $0x18] sm:$0xff]  ;;  %v2671_v24 = vld [vmem:[%s3070_s12 + $0x104] sm:$0xf]  ;;  %v2314_v25 = vld [vmem:[%s3070_s12 + $0x110] sm:$0xf0] }
  0x78   : > { %1615 = vperm.xlu2 %2810, %v1489_v0   ;;  %v2705_v0 = vld [vmem:[%s3527_s3 + $0x10] sm:$0xff] }
  0x79   : > { %1772 = vmatpush.bf16.msrb.mxu0 %v2708_v35  ;;  %v2317_v35 = vor.u32 %v2671_v24, %v2314_v25 }
  0x7b   : > { %1650 = vperm.xlu0 %2808, %v1496_v36  }
  0x7e   : > { %1655 = vperm.xlu1 %2809, %v1497_v49   ;;  %v2277_v49 = vor.u32 %v2660_v41, %v2274_v42 }
  0x80   : > { %1630 = vperm.xlu2 %2810, %v1492_v10   ;;  %v2670_v10 = vld [vmem:[%s3070_s12 + $0xf4] sm:$0xf0] }
  0x84   : > { %1108 = vmatmul.bf16.vlgmr.msrb.gmra.mxu1 %v2189_v45  ;;  %1197 = vmatmul.bf16.vlgmr.msrb.gmra.mxu2 %v2193_v46  ;;  %v2269_v45 = vor.u32 %v2659_v37, %v2266_v38  ;;  %v2273_v46 = vor.u32 %v2662_v40, %v2272_v39  ;;  %v2321_v37 = vor.u32 %v2674_v27, %v2320_v26 }
  0x87   : > { %1286 = vmatmul.bf16.vlgmr.msrb.gmra.mxu3 %v2197_v47  ;;  %v2707_v47 = vld [vmem:[%s3527_s3 + $0x20] sm:$0xff] }
  0x88   : > { %1645 = vperm.xlu2 %2810, %v1495_v19   ;;  %1773 = vmatpush.bf16.msrb.mxu0 %v2707_v47  ;;  %v2703_v19 = vld [vmem:[%s3527_s3] sm:$0xff] }
  0x8c   : > { %1774 = vmatpush.bf16.msrb.mxu0 %v2706_v52 }
  0x90   : > { %1775 = vmatpush.bf16.msrb.mxu0 %v2705_v0 }
  0x94   : > { %1113 = vmatmul.bf16.gmra.mxu1 %v2205_v60  ;;  %1202 = vmatmul.bf16.gmra.mxu2 %v2209_v61 }
  0x97   : > { %1291 = vmatmul.bf16.gmra.mxu3 %v2213_v62  ;;  %v2285_v62 = vor.u32 %v2663_v54, %v2282_v55  ;;  %v2675_v54 = vld [vmem:[%s3070_s12 + $0x124] sm:$0xf]  ;;  %v2330_v55 = vld [vmem:[%s3070_s12 + $0x130] sm:$0xf0] }
  0x9e   : > { %v1511_v26 = vpop.permute.xlu1 %1510 }
  0xa4   : > { %1118 = vmatmul.bf16.gmra.mxu1 %v2221_v7  ;;  %1207 = vmatmul.bf16.gmra.mxu2 %v2225_v8  ;;  %v2704_v7 = vld [vmem:[%s3527_s3 + $0x8] sm:$0xff]  ;;  %v2298_v8 = vld [vmem:[%s3070_s12 + $0xf0] sm:$0xf0] }
  0xa5   : > { %1776 = vmatpush.bf16.msrb.mxu0 %v2704_v7  ;;  %v2301_v15 = vor.u32 %v2667_v6, %v2298_v8  ;;  %v2333_v7 = vor.u32 %v2675_v54, %v2330_v55  ;;  %v2337_v8 = vor.u32 %v2678_v57, %v2336_v56 }
  0xa7   : > { %1296 = vmatmul.bf16.gmra.mxu3 %v2229_v9  ;;  %v2304_v9 = vld [vmem:[%s3070_s12 + $0xe8] sm:$0xf] }
  0xa8   : > { %v2305_v16 = vor.u32 %v2670_v10, %v2304_v9 }
  0xa9   : > { %1777 = vmatpush.bf16.msrb.mxu0 %v2703_v19 }
  0xb4   : > { %1123 = vmatmul.bf16.gmra.mxu1 %v2237_v17  ;;  %1212 = vmatmul.bf16.gmra.mxu2 %v2241_v18  ;;  %v2309_v18 = vor.u32 %v2668_v11, %v2306_v12 }
  0xb7   : > { %1301 = vmatmul.bf16.gmra.mxu3 %v2245_v20 }
  0xc1   : > { %v3278_v31 = vpop.f32.mrf.mxu1 }
  0xc4   : > { %1128 = vmatmul.bf16.gmra.mxu1 %v2253_v28  ;;  %1217 = vmatmul.bf16.gmra.mxu2 %v2257_v29  ;;  %v1020_v21 = vpop.f32.mrf.mxu0  ;;  %v2672_v28 = vld [vmem:[%s3070_s12 + $0x10c] sm:$0xf]  ;;  %v2322_v29 = vld [vmem:[%s3070_s12 + $0x118] sm:$0xf0] }
  0xc5   : > { %v2325_v39 = vor.u32 %v2672_v28, %v2322_v29  ;;  %v2679_v29 = vld [vmem:[%s3070_s12 + $0x144] sm:$0xf] }
  0xc7   : > { %1306 = vmatmul.bf16.gmra.mxu3 %v2261_v32  ;;  %v3280_v33 = vpop.f32.mrf.mxu2 }
  0xc9   : > { %v3287_v36 = vpop.f32.mrf.mxu1 }
  0xca   : > { %v3282_v34 = vpop.f32.mrf.mxu3 }
  0xcc   : > { %v1022_v40 = vpop.f32.mrf.mxu0 }
  0xcf   : > { %v3295_v43 = vpop.f32.mrf.mxu2 }
  0xd1   : > { %v3302_v48 = vpop.f32.mrf.mxu1 }
  0xd2   : > { %v3297_v44 = vpop.f32.mrf.mxu3 }
  0xd4   : > { %1133 = vmatmul.bf16.gmra.mxu1 %v2269_v45  ;;  %1222 = vmatmul.bf16.gmra.mxu2 %v2273_v46  ;;  %v1501_v46 = vpop.permute.xlu0 %1500 }
  0xd7   : > { %1311 = vmatmul.bf16.gmra.mxu3 %v2277_v49  ;;  %v3304_v50 = vpop.f32.mrf.mxu2  ;;  %v1025_v49 = vpop.f32.mrf.mxu0 }
  0xd9   : > { %v3311_v53 = vpop.f32.mrf.mxu1 }
  0xda   : > { %v3306_v51 = vpop.f32.mrf.mxu3 }
  0xdc   : > { %v1506_v12 = vpop.permute.xlu0 %1505 }
  0xdf   : > { %v3319_v60 = vpop.f32.mrf.mxu2 }
  0xe1   : > { %v3326_v1 = vpop.f32.mrf.mxu1 }
  0xe2   : > { %v3321_v61 = vpop.f32.mrf.mxu3 }
  0xe4   : > { %1138 = vmatmul.bf16.gmra.mxu1 %v2285_v62  ;;  %1227 = vmatmul.bf16.gmra.mxu2 %v2289_v63  ;;  %v2338_v62 = vld [vmem:[%s3070_s12 + $0x138] sm:$0xf0] }
  0xe5   : > { %v2341_v10 = vor.u32 %v2676_v59, %v2338_v62 }
  0xe7   : > { %1316 = vmatmul.bf16.gmra.mxu3 %v2293_v2  ;;  %v3328_v3 = vpop.f32.mrf.mxu2 }
  0xe9   : > { %v3332_v5 = vpop.f32.mrf.mxu1 }
  0xea   : > { %v3330_v4 = vpop.f32.mrf.mxu3 }
  0xef   : > { %v3343_v13 = vpop.f32.mrf.mxu2 }
  0xf1   : > { %v3347_v17 = vpop.f32.mrf.mxu1 }
  0xf2   : > { %v3345_v14 = vpop.f32.mrf.mxu3 }
  0xf4   : > { %1143 = vmatmul.bf16.gmra.mxu1 %v2301_v15  ;;  %1232 = vmatmul.bf16.gmra.mxu2 %v2305_v16 }
  0xf7   : > { %1321 = vmatmul.bf16.gmra.mxu3 %v2309_v18  ;;  %v3352_v20 = vpop.f32.mrf.mxu2  ;;  %v1027_v18 = vpop.f32.mrf.mxu0 }
  0xf9   : > { %v3356_v23 = vpop.f32.mrf.mxu1 }
  0xfa   : > { %v3354_v22 = vpop.f32.mrf.mxu3 }
  0xff   : > { %v3364_v30 = vpop.f32.mrf.mxu2 }
 0x101   : > { %v1109_v38 = vpop.f32.mrf.mxu1 }
 0x102   : > { %v3366_v32 = vpop.f32.mrf.mxu3  ;;  %v1110_v42 = vadd.f32 %v1109_v38, %v1020_v21  ;;  %v2682_v38 = vld [vmem:[%s3070_s12 + $0x154] sm:$0xf0] }
 0x104   : > { %1148 = vmatmul.bf16.gmra.mxu1 %v2317_v35  ;;  %1237 = vmatmul.bf16.gmra.mxu2 %v2321_v37  ;;  %v2346_v35 = vld [vmem:[%s3070_s12 + $0x150] sm:$0xf0]  ;;  %v2352_v37 = vld [vmem:[%s3070_s12 + $0x148] sm:$0xf] }
 0x105   : > { %v2349_v54 = vor.u32 %v2679_v29, %v2346_v35  ;;  %v2353_v55 = vor.u32 %v2682_v38, %v2352_v37 }
 0x107   : > { %1326 = vmatmul.bf16.gmra.mxu3 %v2325_v39  ;;  %v1198_v41 = vpop.f32.mrf.mxu2 }
 0x108   : > { %v1199_v52 = vadd.f32 %v1198_v41, %v1110_v42  ;;  %v2354_v41 = vld [vmem:[%s3070_s12 + $0x158] sm:$0xf0]  ;;  %v1030_v42 = vpop.f32.mrf.mxu0 }
 0x109   : > { %v1111_v47 = vpop.f32.mrf.mxu1 }
 0x10a   : > { %v1287_v45 = vpop.f32.mrf.mxu3  ;;  %v1112_v58 = vadd.f32 %v1111_v47, %v1022_v40  ;;  %v2680_v40 = vld [vmem:[%s3070_s12 + $0x14c] sm:$0xf] }
 0x10b   : > { %v1288_v0 = vadd.f32 %v1287_v45, %v1199_v52  ;;  %v2357_v56 = vor.u32 %v2680_v40, %v2354_v41 }
 0x10d   : > { %v1658_v15 = vmul.f32 %v1501_v46, %v1288_v0 }
 0x10f   : > { %v1200_v63 = vpop.f32.mrf.mxu2 }
 0x110   : > { %v1201_v2 = vadd.f32 %v1200_v63, %v1112_v58  ;;  %v1516_v58 = vpop.permute.xlu1 %1515 }
 0x111   : > { %v1114_v9 = vpop.f32.mrf.mxu1 }
 0x112   : > { %v1289_v6 = vpop.f32.mrf.mxu3  ;;  %v1115_v24 = vadd.f32 %v1114_v9, %v1025_v49 }
 0x113   : > { %v1290_v11 = vadd.f32 %v1289_v6, %v1201_v2  ;;  %v1521_v2 = vpop.permute.xlu2 %1520 }
 0x114   : > { %1153 = vmatmul.bf16.gmra.mxu1 %v2333_v7  ;;  %1242 = vmatmul.bf16.gmra.mxu2 %v2337_v8  ;;  %v1032_v8 = vpop.f32.mrf.mxu0 }
 0x115   : > { %v1659_v16 = vmul.f32 %v1506_v12, %v1290_v11  ;;  %v2683_v11 = vld [vmem:[%s3070_s12 + $0x164] sm:$0xf]  ;;  %v2362_v12 = vld [vmem:[%s3070_s12 + $0x170] sm:$0xf0] }
 0x117   : > { %1331 = vmatmul.bf16.gmra.mxu3 %v2341_v10  ;;  %v1690_v19 = vpack.c.bf16 %v1659_v16, %v1658_v15  ;;  %v1203_v21 = vpop.f32.mrf.mxu2  ;;  %v2368_v15 = vld [vmem:[%s3070_s12 + $0x168] sm:$0xf]  ;;  %v2686_v16 = vld [vmem:[%s3070_s12 + $0x174] sm:$0xf0] }
 0x118   : > { %v1204_v28 = vadd.f32 %v1203_v21, %v1115_v24  ;;  %v2370_v21 = vld [vmem:[%s3070_s12 + $0x178] sm:$0xf0]  ;;  %v2369_v29 = vor.u32 %v2686_v16, %v2368_v15  ;;  %v1531_v16 = vpop.permute.xlu0 %1530 }
 0x119   : > { %1778 = vmatmul.bf16.vlgmr.msrb.gmra.mxu0 %v1690_v19  ;;  %v1116_v27 = vpop.f32.mrf.mxu1  ;;  %v2684_v19 = vld [vmem:[%s3070_s12 + $0x16c] sm:$0xf] }
 0x11a   : > { %v1292_v25 = vpop.f32.mrf.mxu3  ;;  %v1117_v39 = vadd.f32 %v1116_v27, %v1027_v18  ;;  %v2373_v37 = vor.u32 %v2684_v19, %v2370_v21 }
 0x11b   : > { %v1293_v46 = vadd.f32 %v1292_v25, %v1204_v28  ;;  %v2365_v28 = vor.u32 %v2683_v11, %v2362_v12 }
 0x11c   : > { %v1035_v40 = vpop.f32.mrf.mxu0 }
 0x11d   : > { %v1660_v59 = vmul.f32 %v1511_v26, %v1293_v46 }
 0x11f   : > { %v1205_v45 = vpop.f32.mrf.mxu2 }
 0x120   : > { %v1206_v47 = vadd.f32 %v1205_v45, %v1117_v39  ;;  %v1526_v39 = vpop.permute.xlu2 %1525 }
 0x121   : > { %v1119_v49 = vpop.f32.mrf.mxu1 }
 0x122   : > { %v1294_v52 = vpop.f32.mrf.mxu3  ;;  %v1120_v6 = vadd.f32 %v1119_v49, %v1030_v42  ;;  %v2687_v49 = vld [vmem:[%s3070_s12 + $0x184] sm:$0xf] }
 0x123   : > { %v1295_v57 = vadd.f32 %v1294_v52, %v1206_v47 }
 0x124   : > { %1158 = vmatmul.bf16.gmra.mxu1 %v2349_v54  ;;  %1247 = vmatmul.bf16.gmra.mxu2 %v2353_v55 }
 0x125   : > { %v1661_v62 = vmul.f32 %v1516_v58, %v1295_v57  ;;  %v2378_v57 = vld [vmem:[%s3070_s12 + $0x190] sm:$0xf0]  ;;  %v2384_v58 = vld [vmem:[%s3070_s12 + $0x188] sm:$0xf] }
 0x127   : > { %1336 = vmatmul.bf16.gmra.mxu3 %v2357_v56  ;;  %v1691_v63 = vpack.c.bf16 %v1661_v62, %v1660_v59  ;;  %v1208_v0 = vpop.f32.mrf.mxu2  ;;  %v1037_v56 = vpop.f32.mrf.mxu0  ;;  %v2690_v59 = vld [vmem:[%s3070_s12 + $0x194] sm:$0xf0] }
 0x128   : > { %v1209_v10 = vadd.f32 %v1208_v0, %v1120_v6  ;;  %v2386_v0 = vld [vmem:[%s3070_s12 + $0x198] sm:$0xf0] }
 0x129   : > { %1783 = vmatmul.bf16.gmra.mxu0 %v1691_v63  ;;  %v1121_v9 = vpop.f32.mrf.mxu1  ;;  %v2688_v63 = vld [vmem:[%s3070_s12 + $0x18c] sm:$0xf] }
 0x12a   : > { %v1297_v7 = vpop.f32.mrf.mxu3  ;;  %v1122_v18 = vadd.f32 %v1121_v9, %v1032_v8  ;;  %v2381_v9 = vor.u32 %v2687_v49, %v2378_v57  ;;  %v2389_v12 = vor.u32 %v2688_v63, %v2386_v0 }
 0x12b   : > { %v1298_v25 = vadd.f32 %v1297_v7, %v1209_v10  ;;  %v2385_v10 = vor.u32 %v2690_v59, %v2384_v58  ;;  %v1541_v58 = vpop.permute.xlu2 %1540 }
 0x12d   : > { %v1662_v41 = vmul.f32 %v1521_v2, %v1298_v25 }
 0x12f   : > { %v1210_v24 = vpop.f32.mrf.mxu2 }
 0x130   : > { %v1211_v26 = vadd.f32 %v1210_v24, %v1122_v18  ;;  %v1536_v18 = vpop.permute.xlu1 %1535 }
 0x131   : > { %v1124_v35 = vpop.f32.mrf.mxu1 }
 0x132   : > { %v1299_v27 = vpop.f32.mrf.mxu3  ;;  %v1125_v47 = vadd.f32 %v1124_v35, %v1035_v40  ;;  %v2691_v35 = vld [vmem:[%s3070_s12 + $0x1a4] sm:$0xf] }
 0x133   : > { %v1300_v38 = vadd.f32 %v1299_v27, %v1211_v26 }
 0x134   : > { %1163 = vmatmul.bf16.gmra.mxu1 %v2365_v28  ;;  %1252 = vmatmul.bf16.gmra.mxu2 %v2369_v29 }
 0x135   : > { %v1663_v42 = vmul.f32 %v1526_v39, %v1300_v38  ;;  %v2400_v38 = vld [vmem:[%s3070_s12 + $0x1a8] sm:$0xf]  ;;  %v2694_v39 = vld [vmem:[%s3070_s12 + $0x1b4] sm:$0xf0] }
 0x137   : > { %1341 = vmatmul.bf16.gmra.mxu3 %v2373_v37  ;;  %v1692_v45 = vpack.c.bf16 %v1663_v42, %v1662_v41  ;;  %v1213_v46 = vpop.f32.mrf.mxu2  ;;  %v2394_v37 = vld [vmem:[%s3070_s12 + $0x1b0] sm:$0xf0]  ;;  %v2692_v41 = vld [vmem:[%s3070_s12 + $0x1ac] sm:$0xf]  ;;  %v2402_v42 = vld [vmem:[%s3070_s12 + $0x1b8] sm:$0xf0] }
 0x138   : > { %v1214_v55 = vadd.f32 %v1213_v46, %v1125_v47 }
 0x139   : > { %1788 = vmatmul.bf16.gmra.mxu0 %v1692_v45  ;;  %v1126_v54 = vpop.f32.mrf.mxu1 }
 0x13a   : > { %v1302_v52 = vpop.f32.mrf.mxu3  ;;  %v1127_v62 = vadd.f32 %v1126_v54, %v1037_v56  ;;  %v2397_v54 = vor.u32 %v2691_v35, %v2394_v37  ;;  %v2405_v56 = vor.u32 %v2692_v41, %v2402_v42  ;;  %v1556_v35 = vpop.permute.xlu2 %1555 }
 0x13b   : > { %v1303_v6 = vadd.f32 %v1302_v52, %v1214_v55  ;;  %v2401_v55 = vor.u32 %v2694_v39, %v2400_v38 }
 0x13d   : > { %v1664_v19 = vmul.f32 %v1531_v16, %v1303_v6  ;;  %v2418_v16 = vld [vmem:[%s3070_s12 + $0x1d8] sm:$0xf0] }
 0x13f   : > { %v1215_v2 = vpop.f32.mrf.mxu2 }
 0x140   : > { %v1216_v7 = vadd.f32 %v1215_v2, %v1127_v62 }
 0x141   : > { %v1129_v11 = vpop.f32.mrf.mxu1 }
 0x142   : > { %v1304_v8 = vpop.f32.mrf.mxu3  ;;  %v1130_v28 = vadd.f32 %v1129_v11, %v3278_v31  ;;  %v1546_v31 = vpop.permute.xlu0 %1545  ;;  %v2698_v11 = vld [vmem:[%s3070_s12 + $0x1d4] sm:$0xf0] }
 0x143   : > { %v1305_v15 = vadd.f32 %v1304_v8, %v1216_v7  ;;  %v2695_v8 = vld [vmem:[%s3070_s12 + $0x1c4] sm:$0xf] }
 0x144   : > { %1168 = vmatmul.bf16.gmra.mxu1 %v2381_v9  ;;  %1257 = vmatmul.bf16.gmra.mxu2 %v2385_v10  ;;  %v2410_v9 = vld [vmem:[%s3070_s12 + $0x1d0] sm:$0xf0]  ;;  %v2416_v10 = vld [vmem:[%s3070_s12 + $0x1c8] sm:$0xf] }
 0x145   : > { %v1665_v21 = vmul.f32 %v1536_v18, %v1305_v15  ;;  %v2696_v15 = vld [vmem:[%s3070_s12 + $0x1cc] sm:$0xf] }
 0x147   : > { %1346 = vmatmul.bf16.gmra.mxu3 %v2389_v12  ;;  %v1693_v24 = vpack.c.bf16 %v1665_v21, %v1664_v19  ;;  %v1218_v25 = vpop.f32.mrf.mxu2 }
 0x148   : > { %v1219_v29 = vadd.f32 %v1218_v25, %v1130_v28  ;;  %v2413_v25 = vor.u32 %v2695_v8, %v2410_v9  ;;  %v2421_v28 = vor.u32 %v2696_v15, %v2418_v16 }
 0x149   : > { %1793 = vmatmul.bf16.gmra.mxu0 %v1693_v24  ;;  %v1131_v27 = vpop.f32.mrf.mxu1 }
 0x14a   : > { %v1307_v26 = vpop.f32.mrf.mxu3  ;;  %v1132_v40 = vadd.f32 %v1131_v27, %v3287_v36 }
 0x14b   : > { %v1308_v46 = vadd.f32 %v1307_v26, %v1219_v29  ;;  %v2417_v26 = vor.u32 %v2698_v11, %v2416_v10 }
 0x14d   : > { %v1666_v59 = vmul.f32 %v1541_v58, %v1308_v46  ;;  %v2699_v46 = vld [vmem:[%s3070_s12 + $0x1e4] sm:$0xf] }
 0x14f   : > { %v1220_v45 = vpop.f32.mrf.mxu2 }
 0x150   : > { %v1221_v47 = vadd.f32 %v1220_v45, %v1132_v40 }
 0x151   : > { %v1134_v49 = vpop.f32.mrf.mxu1 }
 0x152   : > { %v1309_v52 = vpop.f32.mrf.mxu3  ;;  %v1135_v6 = vadd.f32 %v1134_v49, %v3302_v48  ;;  %v1551_v48 = vpop.permute.xlu1 %1550  ;;  %v2700_v49 = vld [vmem:[%s3070_s12 + $0x1ec] sm:$0xf] }
 0x153   : > { %v1310_v57 = vadd.f32 %v1309_v52, %v1221_v47  ;;  %v2426_v47 = vld [vmem:[%s3070_s12 + $0x1f0] sm:$0xf0]  ;;  %v2432_v52 = vld [vmem:[%s3070_s12 + $0x1e8] sm:$0xf] }
 0x154   : > { %1173 = vmatmul.bf16.gmra.mxu1 %v2397_v54  ;;  %1262 = vmatmul.bf16.gmra.mxu2 %v2401_v55  ;;  %v2702_v54 = vld [vmem:[%s3070_s12 + $0x1f4] sm:$0xf0] }
 0x155   : > { %v1667_v62 = vmul.f32 %v1546_v31, %v1310_v57 }
 0x157   : > { %1351 = vmatmul.bf16.gmra.mxu3 %v2405_v56  ;;  %v1694_v36 = vpack.c.bf16 %v1667_v62, %v1666_v59  ;;  %v1223_v63 = vpop.f32.mrf.mxu2  ;;  %v2434_v56 = vld [vmem:[%s3070_s12 + $0x1f8] sm:$0xf0]  ;;  %v2429_v62 = vor.u32 %v2699_v46, %v2426_v47  ;;  %s2178_s12 = sshll.u32 %s3066_s29, 8 }
 0x158   : > { %v1224_v7 = vadd.f32 %v1223_v63, %v1135_v6  ;;  %v1561_v6 = vpop.permute.xlu0 %1560  ;;  %s3421_s10 = scalar_lea.vmem [#allocation6], %s2178_s12 }
 0x159   : > { %1798 = vmatmul.bf16.gmra.mxu0 %v1694_v36  ;;  %v1136_v2 = vpop.f32.mrf.mxu1  ;;  %v2433_v36 = vor.u32 %v2702_v54, %v2432_v52  ;;  %s2020_s14 = sshll.u32 %s3421_s10, 4  ;;  %s2021_s14 = int_to_ptr.vmem [resolvable:$true] %s2020_s14 }
 0x15a   : > { %v1312_v0 = vpop.f32.mrf.mxu3  ;;  %v1137_v12 = vadd.f32 %v1136_v2, %v3311_v53 }
 0x15b   : > { %v1313_v19 = vadd.f32 %v1312_v0, %v1224_v7  ;;  %v2437_v0 = vor.u32 %v2700_v49, %v2434_v56 }
 0x15d   : > { %v1668_v37 = vmul.f32 %v1551_v48, %v1313_v19 }
 0x15f   : > { %v1225_v18 = vpop.f32.mrf.mxu2 }
 0x160   : > { %v1226_v21 = vadd.f32 %v1225_v18, %v1137_v12 }
 0x161   : > { %v1139_v27 = vpop.f32.mrf.mxu1 }
 0x162   : > { %v1314_v24 = vpop.f32.mrf.mxu3  ;;  %v1140_v42 = vadd.f32 %v1139_v27, %v3326_v1  ;;  %v1566_v1 = vpop.permute.xlu1 %1565 }
 0x163   : > { %v1315_v29 = vadd.f32 %v1314_v24, %v1226_v21  ;;  %v1576_v27 = vpop.permute.xlu0 %1575 }
 0x164   : > { %1178 = vmatmul.bf16.gmra.mxu1 %v2413_v25  ;;  %1267 = vmatmul.bf16.gmra.mxu2 %v2417_v26 }
 0x165   : > { %v1669_v38 = vmul.f32 %v1556_v35, %v1315_v29 }
 0x167   : > { %1356 = vmatmul.bf16.gmra.mxu3 %v2421_v28  ;;  %v1695_v53 = vpack.c.bf16 %v1669_v38, %v1668_v37  ;;  %v1228_v39 = vpop.f32.mrf.mxu2  ;;  %v1571_v28 = vpop.permute.xlu2 %1570 }
 0x168   : > { %v1229_v45 = vadd.f32 %v1228_v39, %v1140_v42 }
 0x169   : > { %1803 = vmatmul.bf16.gmra.mxu0 %v1695_v53  ;;  %v1141_v41 = vpop.f32.mrf.mxu1 }
 0x16a   : > { %v1317_v40 = vpop.f32.mrf.mxu3  ;;  %v1142_v55 = vadd.f32 %v1141_v41, %v3332_v5  ;;  %v1581_v52 = vpop.permute.xlu1 %1580 }
 0x16b   : > { %v1318_v31 = vadd.f32 %v1317_v40, %v1229_v45 }
 0x16d   : > { %v1670_v7 = vmul.f32 %v1561_v6, %v1318_v31 }
 0x16f   : > { %v1230_v57 = vpop.f32.mrf.mxu2  ;;  %v1586_v54 = vpop.permute.xlu2 %1585 }
 0x170   : > { %v1231_v58 = vadd.f32 %v1230_v57, %v1142_v55 }
 0x171   : > { %v1144_v63 = vpop.f32.mrf.mxu1 }
 0x172   : > { %v1319_v59 = vpop.f32.mrf.mxu3  ;;  %v1145_v12 = vadd.f32 %v1144_v63, %v3347_v17 }
 0x173   : > { %v1320_v2 = vadd.f32 %v1319_v59, %v1231_v58 }
 0x174   : > { %1183 = vmatmul.bf16.gmra.mxu1 %v2429_v62  ;;  %1272 = vmatmul.bf16.gmra.mxu2 %v2433_v36 }
 0x175   : > { %v1671_v8 = vmul.f32 %v1566_v1, %v1320_v2 }
 0x177   : > { %1361 = vmatmul.bf16.gmra.mxu3 %v2437_v0  ;;  %v1696_v9 = vpack.c.bf16 %v1671_v8, %v1670_v7  ;;  %v1233_v5 = vpop.f32.mrf.mxu2 }
 0x178   : > { %v1234_v15 = vadd.f32 %v1233_v5, %v1145_v12  ;;  %v1596_v12 = vpop.permute.xlu1 %1595 }
 0x179   : > { %1808 = vmatmul.bf16.gmra.mxu0 %v1696_v9  ;;  %v1146_v11 = vpop.f32.mrf.mxu1 }
 0x17a   : > { %v1322_v10 = vpop.f32.mrf.mxu3  ;;  %v1147_v16 = vadd.f32 %v1146_v11, %v3356_v23  ;;  %v1591_v11 = vpop.permute.xlu0 %1590 }
 0x17b   : > { %v1323_v19 = vadd.f32 %v1322_v10, %v1234_v15 }
 0x17d   : > { %v1672_v29 = vmul.f32 %v1571_v28, %v1323_v19 }
 0x17f   : > { %v1235_v18 = vpop.f32.mrf.mxu2 }
 0x180   : > { %v1236_v21 = vadd.f32 %v1235_v18, %v1147_v16 }
 0x181   : > { %v1149_v25 = vpop.f32.mrf.mxu1 }
 0x182   : > { %v1324_v24 = vpop.f32.mrf.mxu3  ;;  %v1150_v17 = vadd.f32 %v1149_v25, %v3280_v33 }
 0x183   : > { %v1325_v26 = vadd.f32 %v1324_v24, %v1236_v21 }
 0x185   : > { %v1673_v48 = vmul.f32 %v1576_v27, %v1325_v26 }
 0x187   : > { %v1697_v35 = vpack.c.bf16 %v1673_v48, %v1672_v29  ;;  %v1238_v37 = vpop.f32.mrf.mxu2 }
 0x188   : > { %v1239_v39 = vadd.f32 %v1238_v37, %v1150_v17 }
 0x189   : > { %1813 = vmatmul.bf16.gmra.mxu0 %v1697_v35  ;;  %v1151_v53 = vpop.f32.mrf.mxu1 }
 0x18a   : > { %v1327_v38 = vpop.f32.mrf.mxu3  ;;  %v1152_v23 = vadd.f32 %v1151_v53, %v3295_v43 }
 0x18b   : > { %v1328_v41 = vadd.f32 %v1327_v38, %v1239_v39 }
 0x18d   : > { %v1674_v55 = vmul.f32 %v1581_v52, %v1328_v41 }
 0x18f   : > { %v1240_v40 = vpop.f32.mrf.mxu2 }
 0x190   : > { %v1241_v42 = vadd.f32 %v1240_v40, %v1152_v23 }
 0x191   : > { %v1154_v46 = vpop.f32.mrf.mxu1 }
 0x192   : > { %v1329_v45 = vpop.f32.mrf.mxu3  ;;  %v1155_v58 = vadd.f32 %v1154_v46, %v3304_v50 }
 0x193   : > { %v1330_v47 = vadd.f32 %v1329_v45, %v1241_v42  ;;  %v1606_v42 = vpop.permute.xlu0 %1605  ;;  %v1601_v45 = vpop.permute.xlu2 %1600 }
 0x195   : > { %v1675_v49 = vmul.f32 %v1586_v54, %v1330_v47 }
 0x196   : > { %v1779_v56 = vpop.f32.mrf.mxu0 }
 0x197   : > { %1859 = vst [vmem:[%s3421_s10] sm:$0xff] %v1779_v56  ;;  %v1698_v33 = vpack.c.bf16 %v1675_v49, %v1674_v55  ;;  %v1243_v57 = vpop.f32.mrf.mxu2  ;;  %v1928_v36 = vmul.f32 %v1779_v56, %v1779_v56 }
 0x198   : > { %v1244_v59 = vadd.f32 %v1243_v57, %v1155_v58 }
 0x199   : > { %1818 = vmatmul.bf16.gmra.mxu0 %v1698_v33  ;;  %v1156_v31 = vpop.f32.mrf.mxu1 }
 0x19a   : > { %v1332_v43 = vpop.f32.mrf.mxu3  ;;  %v1157_v63 = vadd.f32 %v1156_v31, %v3319_v60 }
 0x19b   : > { %v1333_v1 = vadd.f32 %v1332_v43, %v1244_v59 }
 0x19d   : > { %v1676_v15 = vmul.f32 %v1591_v11, %v1333_v1 }
 0x19e   : > { %v1781_v62 = vpop.f32.mrf.mxu0 }
 0x19f   : > { %1860 = vst [vmem:[%s3421_s10 + $0x8] sm:$0xff] %v1781_v62  ;;  %v1929_v0 = vmul.f32 %v1781_v62, %v1781_v62  ;;  %v1891_v2 = vadd.f32 %v1781_v62, %v1779_v56  ;;  %v1245_v6 = vpop.f32.mrf.mxu2 }
 0x1a0   : > { %v1246_v7 = vadd.f32 %v1245_v6, %v1157_v63 }
 0x1a1   : > { %v1960_v9 = vadd.f32 %v1929_v0, %v1928_v36  ;;  %v1159_v5 = vpop.f32.mrf.mxu1 }
 0x1a2   : > { %v1334_v8 = vpop.f32.mrf.mxu3  ;;  %v1160_v27 = vadd.f32 %v1159_v5, %v3328_v3 }
 0x1a3   : > { %v1335_v10 = vadd.f32 %v1334_v8, %v1246_v7  ;;  %v1611_v8 = vpop.permute.xlu1 %1610 }
 0x1a5   : > { %v1677_v50 = vmul.f32 %v1596_v12, %v1335_v10 }
 0x1a6   : > { %v1784_v16 = vpop.f32.mrf.mxu0 }
 0x1a7   : > { %1861 = vst [vmem:[%s3421_s10 + $0x10] sm:$0xff] %v1784_v16  ;;  %v1892_v18 = vadd.f32 %v1891_v2, %v1784_v16  ;;  %v1930_v60 = vmul.f32 %v1784_v16, %v1784_v16  ;;  %v1699_v19 = vpack.c.bf16 %v1677_v50, %v1676_v15  ;;  %v1248_v21 = vpop.f32.mrf.mxu2 }
 0x1a8   : > { %v1249_v28 = vadd.f32 %v1248_v21, %v1160_v27 }
 0x1a9   : > { %v1961_v24 = vadd.f32 %v1960_v9, %v1930_v60  ;;  %1823 = vmatmul.bf16.gmra.mxu0 %v1699_v19  ;;  %v1161_v26 = vpop.f32.mrf.mxu1  ;;  %v1616_v9 = vpop.permute.xlu2 %1615 }
 0x1aa   : > { %v1337_v25 = vpop.f32.mrf.mxu3  ;;  %v1162_v48 = vadd.f32 %v1161_v26, %v3343_v13 }
 0x1ab   : > { %v1338_v53 = vadd.f32 %v1337_v25, %v1249_v28 }
 0x1ad   : > { %v1678_v46 = vmul.f32 %v1601_v45, %v1338_v53  ;;  %v1621_v53 = vpop.permute.xlu0 %1620 }
 0x1ae   : > { %v1786_v29 = vpop.f32.mrf.mxu0 }
 0x1af   : > { %1862 = vst [vmem:[%s3421_s10 + $0x18] sm:$0xff] %v1786_v29  ;;  %v1931_v35 = vmul.f32 %v1786_v29, %v1786_v29  ;;  %v1893_v37 = vadd.f32 %v1892_v18, %v1786_v29  ;;  %v1250_v38 = vpop.f32.mrf.mxu2 }
 0x1b0   : > { %v1251_v17 = vadd.f32 %v1250_v38, %v1162_v48 }
 0x1b1   : > { %v1962_v23 = vadd.f32 %v1961_v24, %v1931_v35  ;;  %v1164_v40 = vpop.f32.mrf.mxu1 }
 0x1b2   : > { %v1339_v39 = vpop.f32.mrf.mxu3  ;;  %v1165_v57 = vadd.f32 %v1164_v40, %v3352_v20 }
 0x1b3   : > { %v1340_v41 = vadd.f32 %v1339_v39, %v1251_v17  ;;  %v1626_v17 = vpop.permute.xlu1 %1625 }
 0x1b5   : > { %v1679_v3 = vmul.f32 %v1606_v42, %v1340_v41 }
 0x1b6   : > { %v1789_v47 = vpop.f32.mrf.mxu0 }
 0x1b7   : > { %1863 = vst [vmem:[%s3421_s10 + $0x20] sm:$0xff] %v1789_v47  ;;  %v1894_v52 = vadd.f32 %v1893_v37, %v1789_v47  ;;  %v1932_v13 = vmul.f32 %v1789_v47, %v1789_v47  ;;  %v1700_v54 = vpack.c.bf16 %v1679_v3, %v1678_v46  ;;  %v1253_v55 = vpop.f32.mrf.mxu2 }
 0x1b8   : > { %v1254_v43 = vadd.f32 %v1253_v55, %v1165_v57 }
 0x1b9   : > { %v1963_v49 = vadd.f32 %v1962_v23, %v1932_v13  ;;  %1828 = vmatmul.bf16.gmra.mxu0 %v1700_v54  ;;  %v1166_v33 = vpop.f32.mrf.mxu1 }
 0x1ba   : > { %v1342_v56 = vpop.f32.mrf.mxu3  ;;  %v1167_v58 = vadd.f32 %v1166_v33, %v3364_v30 }
 0x1bb   : > { %v1343_v63 = vadd.f32 %v1342_v56, %v1254_v43 }
 0x1bd   : > { %v1680_v5 = vmul.f32 %v1611_v8, %v1343_v63 }
 0x1be   : > { %v1791_v31 = vpop.f32.mrf.mxu0 }
 0x1bf   : > { %1864 = vst [vmem:[%s3421_s10 + $0x28] sm:$0xff] %v1791_v31  ;;  %v1933_v59 = vmul.f32 %v1791_v31, %v1791_v31  ;;  %v1895_v62 = vadd.f32 %v1894_v52, %v1791_v31  ;;  %v1255_v36 = vpop.f32.mrf.mxu2 }
 0x1c0   : > { %v1256_v0 = vadd.f32 %v1255_v36, %v1167_v58  ;;  %v1631_v36 = vpop.permute.xlu2 %1630 }
 0x1c1   : > { %v1964_v6 = vadd.f32 %v1963_v49, %v1933_v59  ;;  %v1169_v1 = vpop.f32.mrf.mxu1 }
 0x1c2   : > { %v1344_v2 = vpop.f32.mrf.mxu3  ;;  %v1170_v60 = vadd.f32 %v1169_v1, %v3282_v34 }
 0x1c3   : > { %v1345_v7 = vadd.f32 %v1344_v2, %v1256_v0 }
 0x1c5   : > { %v1681_v20 = vmul.f32 %v1616_v9, %v1345_v7 }
 0x1c6   : > { %v1794_v10 = vpop.f32.mrf.mxu0 }
 0x1c7   : > { %1865 = vst [vmem:[%s3421_s10 + $0x30] sm:$0xff] %v1794_v10  ;;  %v1896_v11 = vadd.f32 %v1895_v62, %v1794_v10  ;;  %v1934_v30 = vmul.f32 %v1794_v10, %v1794_v10  ;;  %v1701_v12 = vpack.c.bf16 %v1681_v20, %v1680_v5  ;;  %v1258_v15 = vpop.f32.mrf.mxu2  ;;  %v1636_v62 = vpop.permute.xlu0 %1635 }
 0x1c8   : > { %v1259_v19 = vadd.f32 %v1258_v15, %v1170_v60 }
 0x1c9   : > { %v1965_v50 = vadd.f32 %v1964_v6, %v1934_v30  ;;  %1833 = vmatmul.bf16.gmra.mxu0 %v1701_v12  ;;  %v1171_v18 = vpop.f32.mrf.mxu1 }
 0x1ca   : > { %v1347_v16 = vpop.f32.mrf.mxu3  ;;  %v1172_v24 = vadd.f32 %v1171_v18, %v3297_v44 }
 0x1cb   : > { %v1348_v28 = vadd.f32 %v1347_v16, %v1259_v19 }
 0x1cd   : > { %v1682_v39 = vmul.f32 %v1621_v53, %v1348_v28 }
 0x1ce   : > { %v1796_v21 = vpop.f32.mrf.mxu0 }
 0x1cf   : > { %1866 = vst [vmem:[%s3421_s10 + $0x38] sm:$0xff] %v1796_v21  ;;  %v1935_v25 = vmul.f32 %v1796_v21, %v1796_v21  ;;  %v1897_v26 = vadd.f32 %v1896_v11, %v1796_v21  ;;  %v1260_v27 = vpop.f32.mrf.mxu2 }
 0x1d0   : > { %v1261_v29 = vadd.f32 %v1260_v27, %v1172_v24  ;;  %v1641_v24 = vpop.permute.xlu1 %1640 }
 0x1d1   : > { %v1966_v35 = vadd.f32 %v1965_v50, %v1935_v25  ;;  %v1174_v37 = vpop.f32.mrf.mxu1  ;;  %v1646_v25 = vpop.permute.xlu2 %1645 }
 0x1d2   : > { %v1349_v48 = vpop.f32.mrf.mxu3  ;;  %v1175_v47 = vadd.f32 %v1174_v37, %v3306_v51 }
 0x1d3   : > { %v1350_v38 = vadd.f32 %v1349_v48, %v1261_v29 }
 0x1d5   : > { %v1683_v34 = vmul.f32 %v1626_v17, %v1350_v38 }
 0x1d6   : > { %v1799_v23 = vpop.f32.mrf.mxu0 }
 0x1d7   : > { %1867 = vst [vmem:[%s3421_s10 + $0x40] sm:$0xff] %v1799_v23  ;;  %v1898_v40 = vadd.f32 %v1897_v26, %v1799_v23  ;;  %v1936_v44 = vmul.f32 %v1799_v23, %v1799_v23  ;;  %v1702_v41 = vpack.c.bf16 %v1683_v34, %v1682_v39  ;;  %v1263_v42 = vpop.f32.mrf.mxu2 }
 0x1d8   : > { %v1264_v52 = vadd.f32 %v1263_v42, %v1175_v47  ;;  %v1651_v47 = vpop.permute.xlu0 %1650 }
 0x1d9   : > { %v1967_v45 = vadd.f32 %v1966_v35, %v1936_v44  ;;  %1838 = vmatmul.bf16.gmra.mxu0 %v1702_v41  ;;  %v1176_v3 = vpop.f32.mrf.mxu1 }
 0x1da   : > { %v1352_v46 = vpop.f32.mrf.mxu3  ;;  %v1177_v54 = vadd.f32 %v1176_v3, %v3321_v61 }
 0x1db   : > { %v1353_v33 = vadd.f32 %v1352_v46, %v1264_v52  ;;  %v1656_v52 = vpop.permute.xlu1 %1655 }
 0x1dd   : > { %v1684_v63 = vmul.f32 %v1631_v36, %v1353_v33 }
 0x1de   : > { %v1801_v13 = vpop.f32.mrf.mxu0 }
 0x1df   : > { %1868 = vst [vmem:[%s3421_s10 + $0x48] sm:$0xff] %v1801_v13  ;;  %v1899_v55 = vadd.f32 %v1898_v40, %v1801_v13  ;;  %v1937_v49 = vmul.f32 %v1801_v13, %v1801_v13  ;;  %v1265_v56 = vpop.f32.mrf.mxu2 }
 0x1e0   : > { %v1266_v43 = vadd.f32 %v1265_v56, %v1177_v54 }
 0x1e1   : > { %v1968_v57 = vadd.f32 %v1967_v45, %v1937_v49  ;;  %v1179_v58 = vpop.f32.mrf.mxu1 }
 0x1e2   : > { %v1354_v31 = vpop.f32.mrf.mxu3  ;;  %v1180_v5 = vadd.f32 %v1179_v58, %v3330_v4 }
 0x1e3   : > { %v1355_v59 = vadd.f32 %v1354_v31, %v1266_v43 }
 0x1e5   : > { %v1685_v51 = vmul.f32 %v1636_v62, %v1355_v59 }
 0x1e6   : > { %v1804_v0 = vpop.f32.mrf.mxu0 }
 0x1e7   : > { %1869 = vst [vmem:[%s3421_s10 + $0x50] sm:$0xff] %v1804_v0  ;;  %v1900_v2 = vadd.f32 %v1899_v55, %v1804_v0  ;;  %v1938_v61 = vmul.f32 %v1804_v0, %v1804_v0  ;;  %v1703_v6 = vpack.c.bf16 %v1685_v51, %v1684_v63  ;;  %v1268_v1 = vpop.f32.mrf.mxu2 }
 0x1e8   : > { %v1269_v20 = vadd.f32 %v1268_v1, %v1180_v5 }
 0x1e9   : > { %v1969_v7 = vadd.f32 %v1968_v57, %v1938_v61  ;;  %1843 = vmatmul.bf16.gmra.mxu0 %v1703_v6  ;;  %v1181_v9 = vpop.f32.mrf.mxu1 }
 0x1ea   : > { %v1357_v8 = vpop.f32.mrf.mxu3  ;;  %v1182_v11 = vadd.f32 %v1181_v9, %v3345_v14 }
 0x1eb   : > { %v1358_v50 = vadd.f32 %v1357_v8, %v1269_v20 }
 0x1ed   : > { %v1686_v26 = vmul.f32 %v1641_v24, %v1358_v50 }
 0x1ee   : > { %v1806_v10 = vpop.f32.mrf.mxu0 }
 0x1ef   : > { %1870 = vst [vmem:[%s3421_s10 + $0x58] sm:$0xff] %v1806_v10  ;;  %v1901_v30 = vadd.f32 %v1900_v2, %v1806_v10  ;;  %v1939_v12 = vmul.f32 %v1806_v10, %v1806_v10  ;;  %v1270_v15 = vpop.f32.mrf.mxu2 }
 0x1f0   : > { %v1271_v18 = vadd.f32 %v1270_v15, %v1182_v11 }
 0x1f1   : > { %v1970_v16 = vadd.f32 %v1969_v7, %v1939_v12  ;;  %v1184_v19 = vpop.f32.mrf.mxu1 }
 0x1f2   : > { %v1359_v60 = vpop.f32.mrf.mxu3  ;;  %v1185_v38 = vadd.f32 %v1184_v19, %v3354_v22 }
 0x1f3   : > { %v1360_v21 = vadd.f32 %v1359_v60, %v1271_v18 }
 0x1f5   : > { %v1687_v4 = vmul.f32 %v1646_v25, %v1360_v21 }
 0x1f6   : > { %v1809_v27 = vpop.f32.mrf.mxu0 }
 0x1f7   : > { %1871 = vst [vmem:[%s3421_s10 + $0x60] sm:$0xff] %v1809_v27  ;;  %v1902_v28 = vadd.f32 %v1901_v30, %v1809_v27  ;;  %v1940_v14 = vmul.f32 %v1809_v27, %v1809_v27  ;;  %v1704_v29 = vpack.c.bf16 %v1687_v4, %v1686_v26  ;;  %v1273_v48 = vpop.f32.mrf.mxu2 }
 0x1f8   : > { %v1274_v17 = vadd.f32 %v1273_v48, %v1185_v38 }
 0x1f9   : > { %v1971_v35 = vadd.f32 %v1970_v16, %v1940_v14  ;;  %1848 = vmatmul.bf16.gmra.mxu0 %v1704_v29  ;;  %v1186_v53 = vpop.f32.mrf.mxu1 }
 0x1fa   : > { %v1362_v37 = vpop.f32.mrf.mxu3  ;;  %v1187_v34 = vadd.f32 %v1186_v53, %v3366_v32 }
 0x1fb   : > { %v1363_v41 = vadd.f32 %v1362_v37, %v1274_v17 }
 0x1fd   : > { %v1688_v22 = vmul.f32 %v1651_v47, %v1363_v41 }
 0x1fe   : > { %v1811_v39 = vpop.f32.mrf.mxu0 }
 0x1ff   : > { %1872 = vst [vmem:[%s3421_s10 + $0x68] sm:$0xff] %v1811_v39  ;;  %v1903_v23 = vadd.f32 %v1902_v28, %v1811_v39  ;;  %v1941_v40 = vmul.f32 %v1811_v39, %v1811_v39  ;;  %v1275_v44 = vpop.f32.mrf.mxu2 }
 0x200   : > { %v1276_v45 = vadd.f32 %v1275_v44, %v1187_v34 }
 0x201   : > { %v1972_v42 = vadd.f32 %v1971_v35, %v1941_v40 }
 0x202   : > { %v1364_v46 = vpop.f32.mrf.mxu3 }
 0x203   : > { %v1365_v3 = vadd.f32 %v1364_v46, %v1276_v45 }
 0x205   : > { %v1689_v13 = vmul.f32 %v1656_v52, %v1365_v3 }
 0x206   : > { %v1814_v54 = vpop.f32.mrf.mxu0 }
 0x207   : > { %1873 = vst [vmem:[%s3421_s10 + $0x70] sm:$0xff] %v1814_v54  ;;  %v1904_v55 = vadd.f32 %v1903_v23, %v1814_v54  ;;  %v1942_v32 = vmul.f32 %v1814_v54, %v1814_v54  ;;  %v1705_v49 = vpack.c.bf16 %v1689_v13, %v1688_v22 }
 0x209   : > { %v1973_v56 = vadd.f32 %v1972_v42, %v1942_v32  ;;  %1853 = vmatmul.bf16.gmra.mxu0 %v1705_v49 }
 0x20e   : > { %v1816_v33 = vpop.f32.mrf.mxu0 }
 0x20f   : > { %1874 = vst [vmem:[%s3421_s10 + $0x78] sm:$0xff] %v1816_v33  ;;  %v1905_v57 = vadd.f32 %v1904_v55, %v1816_v33  ;;  %v1943_v43 = vmul.f32 %v1816_v33, %v1816_v33 }
 0x211   : > { %v1974_v31 = vadd.f32 %v1973_v56, %v1943_v43 }
 0x216   : > { %v1819_v58 = vpop.f32.mrf.mxu0 }
 0x217   : > { %1875 = vst [vmem:[%s3421_s10 + $0x80] sm:$0xff] %v1819_v58  ;;  %v1906_v59 = vadd.f32 %v1905_v57, %v1819_v58  ;;  %v1944_v62 = vmul.f32 %v1819_v58, %v1819_v58 }
 0x219   : > { %v1975_v36 = vadd.f32 %v1974_v31, %v1944_v62 }
 0x21e   : > { %v1821_v63 = vpop.f32.mrf.mxu0 }
 0x21f   : > { %1876 = vst [vmem:[%s3421_s10 + $0x88] sm:$0xff] %v1821_v63  ;;  %v1907_v51 = vadd.f32 %v1906_v59, %v1821_v63  ;;  %v1945_v0 = vmul.f32 %v1821_v63, %v1821_v63 }
 0x221   : > { %v1976_v2 = vadd.f32 %v1975_v36, %v1945_v0 }
 0x226   : > { %v1824_v61 = vpop.f32.mrf.mxu0 }
 0x227   : > { %1877 = vst [vmem:[%s3421_s10 + $0x90] sm:$0xff] %v1824_v61  ;;  %v1908_v6 = vadd.f32 %v1907_v51, %v1824_v61  ;;  %v1946_v1 = vmul.f32 %v1824_v61, %v1824_v61 }
 0x229   : > { %v1977_v7 = vadd.f32 %v1976_v2, %v1946_v1 }
 0x22e   : > { %v1826_v8 = vpop.f32.mrf.mxu0 }
 0x22f   : > { %1878 = vst [vmem:[%s3421_s10 + $0x98] sm:$0xff] %v1826_v8  ;;  %v1909_v9 = vadd.f32 %v1908_v6, %v1826_v8  ;;  %v1947_v5 = vmul.f32 %v1826_v8, %v1826_v8 }
 0x231   : > { %v1978_v20 = vadd.f32 %v1977_v7, %v1947_v5 }
 0x236   : > { %v1829_v10 = vpop.f32.mrf.mxu0 }
 0x237   : > { %1879 = vst [vmem:[%s3421_s10 + $0xa0] sm:$0xff] %v1829_v10  ;;  %v1910_v11 = vadd.f32 %v1909_v9, %v1829_v10  ;;  %v1948_v30 = vmul.f32 %v1829_v10, %v1829_v10 }
 0x239   : > { %v1979_v12 = vadd.f32 %v1978_v20, %v1948_v30 }
 0x23e   : > { %v1831_v15 = vpop.f32.mrf.mxu0 }
 0x23f   : > { %1880 = vst [vmem:[%s3421_s10 + $0xa8] sm:$0xff] %v1831_v15  ;;  %v1949_v25 = vmul.f32 %v1831_v15, %v1831_v15  ;;  %v1911_v26 = vadd.f32 %v1910_v11, %v1831_v15 }
 0x241   : > { %v1980_v27 = vadd.f32 %v1979_v12, %v1949_v25 }
 0x246   : > { %v1834_v50 = vpop.f32.mrf.mxu0 }
 0x247   : > { %1881 = vst [vmem:[%s3421_s10 + $0xb0] sm:$0xff] %v1834_v50  ;;  %v1950_v4 = vmul.f32 %v1834_v50, %v1834_v50  ;;  %v1912_v28 = vadd.f32 %v1911_v26, %v1834_v50 }
 0x249   : > { %v1981_v48 = vadd.f32 %v1980_v27, %v1950_v4 }
 0x24e   : > { %v1836_v16 = vpop.f32.mrf.mxu0 }
 0x24f   : > { %1882 = vst [vmem:[%s3421_s10 + $0xb8] sm:$0xff] %v1836_v16  ;;  %v1951_v14 = vmul.f32 %v1836_v16, %v1836_v16  ;;  %v1913_v35 = vadd.f32 %v1912_v28, %v1836_v16 }
 0x251   : > { %v1982_v38 = vadd.f32 %v1981_v48, %v1951_v14 }
 0x256   : > { %v1839_v18 = vpop.f32.mrf.mxu0 }
 0x257   : > { %1883 = vst [vmem:[%s3421_s10 + $0xc0] sm:$0xff] %v1839_v18  ;;  %v1952_v37 = vmul.f32 %v1839_v18, %v1839_v18  ;;  %v1914_v53 = vadd.f32 %v1913_v35, %v1839_v18 }
 0x259   : > { %v1983_v39 = vadd.f32 %v1982_v38, %v1952_v37 }
 0x25e   : > { %v1841_v60 = vpop.f32.mrf.mxu0 }
 0x25f   : > { %1884 = vst [vmem:[%s3421_s10 + $0xc8] sm:$0xff] %v1841_v60  ;;  %v1953_v17 = vmul.f32 %v1841_v60, %v1841_v60  ;;  %v1915_v34 = vadd.f32 %v1914_v53, %v1841_v60 }
 0x261   : > { %v1984_v40 = vadd.f32 %v1983_v39, %v1953_v17 }
 0x266   : > { %v1844_v19 = vpop.f32.mrf.mxu0 }
 0x267   : > { %1885 = vst [vmem:[%s3421_s10 + $0xd0] sm:$0xff] %v1844_v19  ;;  %v1954_v23 = vmul.f32 %v1844_v19, %v1844_v19  ;;  %v1916_v44 = vadd.f32 %v1915_v34, %v1844_v19 }
 0x269   : > { %v1985_v45 = vadd.f32 %v1984_v40, %v1954_v23 }
 0x26e   : > { %v1846_v21 = vpop.f32.mrf.mxu0 }
 0x26f   : > { %1886 = vst [vmem:[%s3421_s10 + $0xd8] sm:$0xff] %v1846_v21  ;;  %v1955_v41 = vmul.f32 %v1846_v21, %v1846_v21  ;;  %v1917_v46 = vadd.f32 %v1916_v44, %v1846_v21 }
 0x271   : > { %v1986_v47 = vadd.f32 %v1985_v45, %v1955_v41 }
 0x276   : > { %v1849_v24 = vpop.f32.mrf.mxu0 }
 0x277   : > { %1887 = vst [vmem:[%s3421_s10 + $0xe0] sm:$0xff] %v1849_v24  ;;  %v1956_v3 = vmul.f32 %v1849_v24, %v1849_v24  ;;  %v1918_v52 = vadd.f32 %v1917_v46, %v1849_v24 }
 0x279   : > { %v1987_v13 = vadd.f32 %v1986_v47, %v1956_v3 }
 0x27e   : > { %v1851_v29 = vpop.f32.mrf.mxu0 }
 0x27f   : > { %1888 = vst [vmem:[%s3421_s10 + $0xe8] sm:$0xff] %v1851_v29  ;;  %v1957_v22 = vmul.f32 %v1851_v29, %v1851_v29  ;;  %v1919_v54 = vadd.f32 %v1918_v52, %v1851_v29 }
 0x281   : > { %v1988_v32 = vadd.f32 %v1987_v13, %v1957_v22 }
 0x286   : > { %v1854_v42 = vpop.f32.mrf.mxu0 }
 0x287   : > { %1889 = vst [vmem:[%s3421_s10 + $0xf0] sm:$0xff] %v1854_v42  ;;  %v1958_v55 = vmul.f32 %v1854_v42, %v1854_v42  ;;  %v1920_v49 = vadd.f32 %v1919_v54, %v1854_v42 }
 0x289   : > { %v1989_v33 = vadd.f32 %v1988_v32, %v1958_v55 }
 0x28e   : > { %v1856_v56 = vpop.f32.mrf.mxu0 }
 0x28f   : > { %1890 = vst [vmem:[%s3421_s10 + $0xf8] sm:$0xff] %v1856_v56  ;;  %v1921_v57 = vadd.f32 %v1920_v49, %v1856_v56  ;;  %v1959_v43 = vmul.f32 %v1856_v56, %v1856_v56 }
 0x290   : > { %2868 = shalt.err (!%p2865_p0)
}
 0x291   : > { %s2960_s10 = smov 128   ;;  %s2961_s28 = smov 8   ;;  %v1922_v31 = vrot.slane %v1921_v57, 4  ;;  %v1990_v58 = vadd.f32 %v1989_v33, %v1959_v43  ;;  %vm1997_vm0 = vcmask 1040384   ;;  %vm1999_vm1 = vcmask 1041408  }
 0x292   : > { %2738 = dma.vmem_to_hbm [thread:$0]  (%p3043_p9), %s2021_s14, 4096, %s2023_s15, %s2003_s16, %s2960_s10, %s2960_s10, %s2961_s28  }
 0x293   : > { %v1923_v59 = vadd.f32 %v1922_v31, %v1921_v57  ;;  %v1991_v62 = vrot.slane %v1990_v58, 4  ;;  %s2179_s9 = sshll.u32 %s3066_s29, 3  ;;  %s2602_s13 = sshll.u32 %s2947_s21, 3 }
 0x294   : > { %s2035_s25 = scalar_lea.hbm %s3529_s5, %s2602_s13  ;;  %s288_s14 = scalar_lea.vmem [#allocation7], %s2179_s9 }
 0x295   : > { %v1924_v36 = vrot.slane %v1923_v59, 2  ;;  %v1992_v63 = vadd.f32 %v1991_v62, %v1990_v58  ;;  %s2037_s15 = sshll.u32 %s288_s14, 4  ;;  %s2039_s16 = sshll.u32 %s2035_s25, 4  ;;  %s2038_s15 = int_to_ptr.vmem [resolvable:$true] %s2037_s15  ;;  %s2040_s16 = int_to_ptr.hbm [resolvable:$true] %s2039_s16 }
 0x296   : > { %s2008_s21 = scalar_lea.sflag [#allocation8], %s3066_s29  ;;  %s2883_s27 = sshra.s32 %s2040_s16, 4  ;;  %s2884_s27 = int_to_ptr.hbm [resolvable:$true] %s2883_s27 }
 0x297   : > { %v1925_v51 = vadd.f32 %v1924_v36, %v1923_v59  ;;  %v1993_v0 = vrot.slane %v1992_v63, 2  ;;  %s2885_s30 = scalar_lea.hbm %s2884_s27, 8  ;;  %s2889_s10 = scalar_lea.hbm %s3529_s5, 16 }
 0x298   : > { %p2886_p1 = scmp.ne.s32.totalorder %s2884_s27, %s2885_s30  ;;  %p2890_p4 = scmp.lt.s32.totalorder %s2884_s27, %s3529_s5 }
 0x299   : > { %v1926_v2 = vrot.slane %v1925_v51, 1  ;;  %v1994_v61 = vadd.f32 %v1993_v0, %v1992_v63  ;;  %p2891_p5 = scmp.lt.s32.totalorder %s2889_s10, %s2885_s30 }
 0x29a   : > { %p2887_p2 = pnand %p2886_p1, %p3043_p9 }
 0x29b   : > { %v1995_v6 = vrot.slane %v1994_v61, 1  ;;  %v1927_v1 = vadd.f32 %v1926_v2, %v1925_v51  ;;  %p2892_p6 = por %p2891_p5, %p2890_p4 }
 0x29c   : > { %p2888_p3 = pneg %p2887_p2 }
 0x29d   : > { %v1996_v7 = vadd.f32 %v1995_v6, %v1994_v61 }
 0x29e   : > { %p2893_p7 = pnand %p2892_p6, %p2888_p3 }
 0x29f   : > { %v1998_v8 = vsel %vm1997_vm0, %v1927_v1, %v1996_v7 }
 0x2a0   : > { %v2000_v9 = vsel %vm1999_vm1, %v1998_v8, 0.0 }
 0x2a1   : > { %2001 = vst [vmem:[%s288_s14] sm:$0xff] %v2000_v9 }
 0x2a2   : > { %2896 = shalt.err (!%p2893_p7)
}
 0x2a3   : > { %2739 = dma.vmem_to_hbm [thread:$0]  (%p3043_p9), %s2038_s15, 128, %s2040_s16, %s2008_s21  }
 0x2a4 PF: > { %s2051_s29 = sand.u32 1, %s2935_s18   ;;  %p2747_p8 = pnand %p2171_p12, %p3050_p11 }
 0x2a5   : > { %s2052_s13 = scalar_lea.sflag [#allocation5], %s2051_s29 }
 0x2a6   : > { %p2748_p10 = pneg %p2747_p8 }
 0x2a8   : > { %2926 = dma.done.wait (%p2748_p10), %s2052_s13, 4096  }
 0x2a9   : > { %2928 = vsyncadd (%p2748_p10), %s2052_s13, 4294963200  ;;  %s2062_s17 = scalar_lea.sflag [#allocation8], %s2051_s29 }
 0x2aa   : > { %2930 = dma.done.wait (%p2748_p10), %s2062_s17, 128  }
 0x2ab   : > { %2932 = vsyncadd (%p2748_p10), %s2062_s17, 4294967168  ;;  %s25_s23 = sadd.s32 1, %s2955_s23   ;;  %s3534_s18 = smov %s2939_s19 }
 0x2ac   : > { %p22_p13 = scmp.ge.s32.totalorder %s25_s23, 4   ;;  %s3535_s19 = smov %s2943_s20 }
 0x2ad   : > { %s3536_s20 = smov %s3048_s7  ;;  %s3537_s21 = smov %s2951_s22 }
 0x2ae   : > { %s3538_s22 = smov %s3540_s26  ;;  %24 = sbr.rel (!%p22_p13) target bundleno = 8 (0x8), region = 110 }
 0x2b3   :  { %2068 = vsyncpa [#allocation4], 1 }
 0x2b4   :  { %2070 = vsyncpa [#allocation4 + $0x1], 1 }
 0x2b5   :  { %2071 = vsyncpa [#allocation5], 1 }
 0x2b6   :  { %2073 = vsyncpa [#allocation5 + $0x1], 1 }
 0x2b7   :  { %2074 = vsyncpa [#allocation8], 1 }
 0x2b8   :  { %2076 = vsyncpa [#allocation8 + $0x1], 1 }

</bundles_post_ra>
